<compile_context>
chip_gen: v7x
topology: tpu7x:2x2x1
jax: 0.10.0
libtpu: 0.0.40
codegen_flags: <defaults>
</compile_context>

<pallas_src>
import functools

import jax
import jax.numpy as jnp
from jax.experimental import pallas as pl
from jax.experimental.pallas import tpu as pltpu


def _round_up(v, m):
    return ((v + m - 1) // m) * m


def _conv_bn_act_kernel(x0_ref, x1_ref, w_ref, sb_ref, o_ref, *,
                        KH, KW, stride, WPp, TH, halo, act_type,
                        negative_slope):
    # x0_ref : (1, R_in, Cin)        bf16 flat pixel rows of this row tile
    # x1_ref : (1, R_in, Cin)        bf16 flat pixel rows of the NEXT tile (halo)
    # w_ref  : (KH*KW*Cin, Coutp)    bf16 conv weight, K = all taps folded
    # sb_ref : (2, Coutp)            f32 folded BN scale (row 0) / bias (row 1)
    # o_ref  : (1, TH*WPp, Coutp)    per-tile output (garbage cols sliced off outside)
    M = TH * WPp

    # Window of flat pixel rows needed by this tile (tile rows + KH-row halo).
    window = jnp.concatenate([x0_ref[0], x1_ref[0, :halo, :]], axis=0)

    # Implicit im2col: each tap is a contiguous (strided for stride>1) sublane
    # slice; lane-concat all KH*KW taps -> (M, KH*KW*Cin) panel.
    pieces = []
    for kh in range(KH):                       # static tap loops (slices only)
        for kw in range(KW):
            a = kh * WPp + kw
            pieces.append(window[a:a + (M - 1) * stride + 1:stride, :])
    panel = pieces[0] if len(pieces) == 1 else jnp.concatenate(pieces, axis=-1)

    # One MXU matmul per row tile, f32 accumulation.
    y = jnp.dot(panel, w_ref[...], preferred_element_type=jnp.float32)

    # Fused BN (eval) + activation epilogue.
    y = y * sb_ref[0:1, :] + sb_ref[1:2, :]
    if act_type == "leakyrelu":
        y = jnp.where(y >= 0.0, y, negative_slope * y)
    elif act_type == "relu":
        y = jnp.maximum(y, 0.0)
    elif act_type == "silu":
        y = y * jax.nn.sigmoid(y)
    o_ref[0] = y.astype(o_ref.dtype)


def conv_bn_act_block(x_nchw, weight, gamma, beta, running_mean, running_var,
                      *, stride=1, padding=1, eps=1e-5, act_type="leakyrelu",
                      negative_slope=0.1, row_tile=None, out_dtype=jnp.float32):
    """Forward of ConvBnActBlock (groups=1, has_bn=True, has_act=True)."""
    N, Cin, H, W = x_nchw.shape
    Cout, Cin_w, KH, KW = weight.shape
    assert Cin_w == Cin, "groups != 1 not supported"  # TODO(synk): grouped conv
    OH = (H + 2 * padding - KH) // stride + 1
    OW = (W + 2 * padding - KW) // stride + 1
    HP, WP = H + 2 * padding, W + 2 * padding

    LANE = 128
    WPp = _round_up(WP, 16)          # keep flat-row blocks bf16-sublane aligned
    Coutp = _round_up(Cout, LANE)    # lane-dense output stores
    K = KH * KW * Cin                # folded contraction dim

    # ---- row tiling: target matmul M ~ 256 rows; halo must fit in one tile ----
    if row_tile is None:
        TH = max(1, 256 // WPp)
    else:
        TH = max(1, int(row_tile))
    TH = max(TH, pl.cdiv(KH, stride))            # TH*stride >= KH (halo fits)
    TH = min(TH, max(OH, pl.cdiv(KH, stride)))   # don't over-tile tiny outputs
    n_tiles = pl.cdiv(OH, TH)
    R_in = TH * stride * WPp         # flat rows consumed per tile step
    halo = KH * WPp                  # extra flat rows borrowed from next tile
    M = TH * WPp                     # matmul rows per tile (incl. garbage cols)
    L_pad = (n_tiles + 1) * R_in     # flat rows incl. the shifted halo operand

    # ---- activations: NCHW -> padded NHWC bf16 -> flat pixel rows ----
    x = jnp.transpose(x_nchw, (0, 2, 3, 1)).astype(jnp.bfloat16)
    xp = jnp.pad(x, ((0, 0), (padding, padding),
                     (padding, padding + (WPp - WP)), (0, 0)))
    xflat = xp.reshape(N, HP * WPp, Cin)
    assert L_pad >= HP * WPp
    xflat = jnp.pad(xflat, ((0, 0), (0, L_pad - HP * WPp), (0, 0)))

    # ---- weight: (Cout, Cin, KH, KW) -> (KH*KW*Cin, Coutp), tap order = panel order ----
    w = jnp.transpose(weight, (2, 3, 1, 0)).reshape(K, Cout)
    w = jnp.pad(w, ((0, 0), (0, Coutp - Cout))).astype(jnp.bfloat16)

    # ---- fold BN (eval semantics) into a single (2, Coutp) scale/bias operand ----
    scale = (gamma / jnp.sqrt(running_var + eps)).astype(jnp.float32)
    bias = (beta - running_mean * scale).astype(jnp.float32)
    sb = jnp.pad(jnp.stack([scale, bias], axis=0), ((0, 0), (0, Coutp - Cout)))

    # ---- per-step VMEM estimate (blocks double-buffered + working values) ----
    cin_l = _round_up(Cin, LANE)
    out_bytes = jnp.dtype(out_dtype).itemsize
    x_blk = R_in * cin_l * 2
    w_b = _round_up(K, 16) * Coutp * 2
    sb_b = 8 * Coutp * 4
    out_blk = M * Coutp * out_bytes
    work = ((R_in + halo) * cin_l * 2 + M * _round_up(K, LANE) * 2
            + 2 * M * Coutp * 4)
    est = 2 * (2 * x_blk) + 2 * w_b + 2 * sb_b + 2 * out_blk + work + (1 << 20)
    vmem_limit = int(min(max(est, 8 * 2 ** 20), 100 * 2 ** 20))

    kernel = functools.partial(
        _conv_bn_act_kernel, KH=KH, KW=KW, stride=stride, WPp=WPp, TH=TH,
        halo=halo, act_type=act_type, negative_slope=negative_slope)

    out_p = pl.pallas_call(
        kernel,
        out_shape=jax.ShapeDtypeStruct((N, n_tiles * M, Coutp), out_dtype),
        grid=(N, n_tiles),
        in_specs=[
            # this tile's flat pixel rows
            pl.BlockSpec((1, R_in, Cin), lambda n, rt: (n, rt, 0)),
            # next tile's flat pixel rows (halo source)
            pl.BlockSpec((1, R_in, Cin), lambda n, rt: (n, rt + 1, 0)),
            # grid-invariant operands: DMA'd once
            pl.BlockSpec((K, Coutp), lambda n, rt: (0, 0)),
            pl.BlockSpec((2, Coutp), lambda n, rt: (0, 0)),
        ],
        out_specs=pl.BlockSpec((1, M, Coutp), lambda n, rt: (n, rt, 0)),
        compiler_params=pltpu.CompilerParams(
            dimension_semantics=("parallel", "parallel"),
            vmem_limit_bytes=vmem_limit),
    )(xflat, xflat, w, sb)

    # Drop row-padding, garbage width columns and Cout lane padding; back to NCHW.
    out = out_p.reshape(N, n_tiles * TH, WPp, Coutp)[:, :OH, :OW, :Cout]
    return jnp.transpose(out, (0, 3, 1, 2))


if __name__ == "__main__":
    key = jax.random.PRNGKey(0)
    k_x, k_w, k_g, k_b = jax.random.split(key, 4)

    # ConvBnActBlock(inplanes=4, planes=8, kernel_size=3, stride=1, padding=1)
    N, Cin, H, W = 2, 4, 16, 16
    Cout, KH, KW = 8, 3, 3
    stride, padding = 1, 1

    x = jax.random.normal(k_x, (N, Cin, H, W), dtype=jnp.float32)
    weight = jax.random.normal(k_w, (Cout, Cin, KH, KW), dtype=jnp.float32) * 0.1
    gamma = jax.random.normal(k_g, (Cout,), dtype=jnp.float32) * 0.1 + 1.0
    beta = jax.random.normal(k_b, (Cout,), dtype=jnp.float32) * 0.1
    running_mean = jnp.zeros((Cout,), jnp.float32)
    running_var = jnp.ones((Cout,), jnp.float32)

    out = conv_bn_act_block(x, weight, gamma, beta, running_mean, running_var,
                            stride=stride, padding=padding)
    out = jax.block_until_ready(out)

    # Reference: the kernel feeds bf16 inputs to the MXU with f32 accumulation,
    # so compare against a high-precision conv of bf16-rounded inputs (identical
    # quantization, exact accumulation) at tight tolerance.
    xq = x.astype(jnp.bfloat16).astype(jnp.float32)
    wq = weight.astype(jnp.bfloat16).astype(jnp.float32)
    ref = jax.lax.conv_general_dilated(
        xq, wq, (stride, stride), [(padding, padding), (padding, padding)],
        dimension_numbers=("NCHW", "OIHW", "NCHW"),
        precision=jax.lax.Precision.HIGHEST)
    eps = 1e-5
    scale = gamma / jnp.sqrt(running_var + eps)
    bias = beta - running_mean * scale
    ref = ref * scale[None, :, None, None] + bias[None, :, None, None]
    ref = jnp.where(ref >= 0, ref, 0.1 * ref)

    assert out.shape == (N, Cout, H, W)
    assert jnp.allclose(out, ref, atol=2e-3, rtol=2e-3), "mismatch vs reference"
    print("KERNEL_OK")
</pallas_src>

<mosaic_0001>
module attributes {stable_mosaic.version = 11 : i64} {
  func.func @_conv_bn_act_kernel(%arg0: i32, %arg1: i32, %arg2: memref<1x256x4xbf16, #tpu.memory_space<vmem>>, %arg3: memref<1x256x4xbf16, #tpu.memory_space<vmem>>, %arg4: memref<36x128xbf16, #tpu.memory_space<vmem>>, %arg5: memref<2x128xf32, #tpu.memory_space<vmem>>, %arg6: memref<1x256x128xf32, #tpu.memory_space<vmem>>) attributes {dimension_semantics = [#tpu.dimension_semantics<parallel>, #tpu.dimension_semantics<parallel>], iteration_bounds = array<i64: 2, 2>, scalar_prefetch = 0 : i64, scratch_operands = 0 : i64, tpu.core_type = #tpu.core_type<tc>, window_params = [{transform_indices = @transform_0, window_bounds = array<i64: 1, 256, 4>}, {transform_indices = @transform_1, window_bounds = array<i64: 1, 256, 4>}, {pipeline_mode = #tpu.pipeline_mode<synchronous>, transform_indices = @transform_2, window_bounds = array<i64: 36, 128>}, {pipeline_mode = #tpu.pipeline_mode<synchronous>, transform_indices = @transform_3, window_bounds = array<i64: 2, 128>}, {transform_indices = @transform_4, window_bounds = array<i64: 1, 256, 128>}]} {
    %c0 = arith.constant 0 : index
    %c0_0 = arith.constant 0 : index
    %c0_1 = arith.constant 0 : index
    %0 = vector.load %arg2[%c0, %c0_0, %c0_1] : memref<1x256x4xbf16, #tpu.memory_space<vmem>>, vector<1x256x4xbf16>
    %1 = vector.shape_cast %0 : vector<1x256x4xbf16> to vector<256x4xbf16>
    %c0_2 = arith.constant 0 : index
    %c0_3 = arith.constant 0 : index
    %c0_4 = arith.constant 0 : index
    %2 = vector.load %arg3[%c0_2, %c0_3, %c0_4] : memref<1x256x4xbf16, #tpu.memory_space<vmem>>, vector<1x96x4xbf16>
    %3 = vector.shape_cast %2 : vector<1x96x4xbf16> to vector<96x4xbf16>
    %4 = tpu.concatenate %1, %3 in 0 : vector<256x4xbf16>, vector<96x4xbf16> -> vector<352x4xbf16>
    %5 = vector.extract_strided_slice %4 {offsets = [0, 0], sizes = [256, 4], strides = [1, 1]} : vector<352x4xbf16> to vector<256x4xbf16>
    %6 = vector.extract_strided_slice %4 {offsets = [1, 0], sizes = [256, 4], strides = [1, 1]} : vector<352x4xbf16> to vector<256x4xbf16>
    %7 = vector.extract_strided_slice %4 {offsets = [2, 0], sizes = [256, 4], strides = [1, 1]} : vector<352x4xbf16> to vector<256x4xbf16>
    %8 = vector.extract_strided_slice %4 {offsets = [32, 0], sizes = [256, 4], strides = [1, 1]} : vector<352x4xbf16> to vector<256x4xbf16>
    %9 = vector.extract_strided_slice %4 {offsets = [33, 0], sizes = [256, 4], strides = [1, 1]} : vector<352x4xbf16> to vector<256x4xbf16>
    %10 = vector.extract_strided_slice %4 {offsets = [34, 0], sizes = [256, 4], strides = [1, 1]} : vector<352x4xbf16> to vector<256x4xbf16>
    %11 = vector.extract_strided_slice %4 {offsets = [64, 0], sizes = [256, 4], strides = [1, 1]} : vector<352x4xbf16> to vector<256x4xbf16>
    %12 = vector.extract_strided_slice %4 {offsets = [65, 0], sizes = [256, 4], strides = [1, 1]} : vector<352x4xbf16> to vector<256x4xbf16>
    %13 = vector.extract_strided_slice %4 {offsets = [66, 0], sizes = [256, 4], strides = [1, 1]} : vector<352x4xbf16> to vector<256x4xbf16>
    %14 = tpu.concatenate %5, %6, %7, %8, %9, %10, %11, %12, %13 in 1 : vector<256x4xbf16>, vector<256x4xbf16>, vector<256x4xbf16>, vector<256x4xbf16>, vector<256x4xbf16>, vector<256x4xbf16>, vector<256x4xbf16>, vector<256x4xbf16>, vector<256x4xbf16> -> vector<256x36xbf16>
    %c0_5 = arith.constant 0 : index
    %c0_6 = arith.constant 0 : index
    %15 = vector.load %arg4[%c0_5, %c0_6] : memref<36x128xbf16, #tpu.memory_space<vmem>>, vector<36x128xbf16>
    %cst = arith.constant dense<0.000000e+00> : vector<256x128xf32>
    %16 = tpu.matmul %14, %15, %cst {dimension_numbers = #tpu.dot_dimension_numbers<[1], [0], [0], [1], [0, 0, 1, 1], [], []>} : vector<256x36xbf16>, vector<36x128xbf16>, vector<256x128xf32> -> vector<256x128xf32>
    %c0_7 = arith.constant 0 : index
    %c0_8 = arith.constant 0 : index
    %17 = vector.load %arg5[%c0_7, %c0_8] : memref<2x128xf32, #tpu.memory_space<vmem>>, vector<1x128xf32>
    %18 = vector.broadcast %17 : vector<1x128xf32> to vector<256x128xf32>
    %19 = arith.mulf %16, %18 : vector<256x128xf32>
    %c1 = arith.constant 1 : index
    %c0_9 = arith.constant 0 : index
    %20 = vector.load %arg5[%c1, %c0_9] : memref<2x128xf32, #tpu.memory_space<vmem>>, vector<1x128xf32>
    %21 = vector.broadcast %20 : vector<1x128xf32> to vector<256x128xf32>
    %22 = arith.addf %19, %21 : vector<256x128xf32>
    %cst_10 = arith.constant 0.000000e+00 : f32
    %23 = vector.broadcast %cst_10 : f32 to vector<256x128xf32>
    %24 = arith.cmpf oge, %22, %23 : vector<256x128xf32>
    %cst_11 = arith.constant 1.000000e-01 : f32
    %25 = vector.broadcast %cst_11 : f32 to vector<256x128xf32>
    %26 = arith.mulf %25, %22 : vector<256x128xf32>
    %27 = arith.select %24, %22, %26 : vector<256x128xi1>, vector<256x128xf32>
    %c0_12 = arith.constant 0 : index
    %c0_13 = arith.constant 0 : index
    %c0_14 = arith.constant 0 : index
    %28 = vector.load %arg6[%c0_12, %c0_13, %c0_14] : memref<1x256x128xf32, #tpu.memory_space<vmem>>, vector<1x256x128xf32>
    %29 = vector.shape_cast %28 : vector<1x256x128xf32> to vector<256x128xf32>
    %30 = vector.shape_cast %27 : vector<256x128xf32> to vector<1x256x128xf32>
    tpu.vector_store %arg6[%c0_12, %c0_13, %c0_14], %30 {strides = array<i32>} : memref<1x256x128xf32, #tpu.memory_space<vmem>>, vector<1x256x128xf32>,
    return
  }
  func.func @transform_0(%arg0: i32, %arg1: i32) -> (i32, i32, i32) {
    %c0_i32 = arith.constant 0 : i32
    %c0_i32_0 = arith.constant 0 : i32
    return %arg0, %arg1, %c0_i32 : i32, i32, i32
  }
  func.func @transform_1(%arg0: i32, %arg1: i32) -> (i32, i32, i32) {
    %c1_i32 = arith.constant 1 : i32
    %0 = arith.addi %arg1, %c1_i32 : i32
    %c0_i32 = arith.constant 0 : i32
    %c0_i32_0 = arith.constant 0 : i32
    return %arg0, %0, %c0_i32 : i32, i32, i32
  }
  func.func @transform_2(%arg0: i32, %arg1: i32) -> (i32, i32) {
    %c0_i32 = arith.constant 0 : i32
    %c0_i32_0 = arith.constant 0 : i32
    %c0_i32_1 = arith.constant 0 : i32
    return %c0_i32, %c0_i32_0 : i32, i32
  }
  func.func @transform_3(%arg0: i32, %arg1: i32) -> (i32, i32) {
    %c0_i32 = arith.constant 0 : i32
    %c0_i32_0 = arith.constant 0 : i32
    %c0_i32_1 = arith.constant 0 : i32
    return %c0_i32, %c0_i32_0 : i32, i32
  }
  func.func @transform_4(%arg0: i32, %arg1: i32) -> (i32, i32, i32) {
    %c0_i32 = arith.constant 0 : i32
    %c0_i32_0 = arith.constant 0 : i32
    return %arg0, %arg1, %c0_i32 : i32, i32, i32
  }
}

</mosaic_0001>

<bundles_post_ra>
// kernel: tpu_custom_call.1
= control target key start
LH: loop header
LB: loop body
LE: loop exit
PB: predicated region body
PF: predicated region fallthrough
CT: control target
= control target key end

     0   :  { %9 = vsyncpa [#allocation3], 0  ;;  %s3074_s0 = inlined_call_operand.vmem [shape: bf16[2,768,4], index: 0, kind: input, shape index: {}]   ;;  %s3075_s1 = inlined_call_operand.vmem [shape: bf16[2,768,4], index: 1, kind: input, shape index: {}]   ;;  %s3076_s2 = inlined_call_operand.vmem [shape: bf16[36,128], index: 2, kind: input, shape index: {}]   ;;  %s3077_s3 = inlined_call_operand.vmem [shape: f32[2,128], index: 3, kind: input, shape index: {}]   ;;  %s3078_s4 = inlined_call_operand.hbm [shape: f32[2,512,128], index: 4, kind: output, shape index: {}]  }
   0x1   :  { %11 = vsyncpa [#allocation3 + $0x1], 0  ;;  %s2042_s15 = smov 0   ;;  %s2044_s16 = smov 0  }
   0x2   :  { %s2046_s17 = smov 0   ;;  %s2048_s18 = smov 0  }
   0x3   :  { %s2050_s19 = smov 0   ;;  %s2052_s20 = smov 0  }
   0x4   :  { %s2054_s21 = smov 0   ;;  %s2056_s22 = smov 0  }
   0x5 LB: > { %s1681_s23 = sadd.s32 4294967295, %s2005_s22   ;;  %s1682_s24 = sadd.s32 4294967294, %s2005_s22   ;;  %s2005_s22 = sphi %s2056_s22, %s17_s22   ;;  %s2001_s21 = sphi %s2054_s21, %s3104_s21   ;;  %s1997_s20 = sphi %s2052_s20, %s3103_s20   ;;  %s1993_s19 = sphi %s2050_s19, %s3102_s19   ;;  %s1989_s18 = sphi %s2048_s18, %s3101_s18   ;;  %s1985_s17 = sphi %s2046_s17, %s3100_s17   ;;  %s1981_s16 = sphi %s2044_s16, %s3099_s16   ;;  %s1977_s15 = sphi %s2042_s15, %s3098_s15  }
   0x6   : > { %s26_s25 = sadd.s32 1, %s1997_s20  ;;  %s29_s26 = sadd.s32 1, %s2001_s21 }
   0x7   : > { %p27_p0 = scmp.ge.s32.totalorder %s26_s25, 2  ;;  %p148_p1 = scmp.ne.s32.totalorder %s1985_s17, %s1981_s16 }
   0x8   : > { %p149_p2 = scmp.eq.s32.totalorder %s1681_s23, 3  ;;  %p154_p5 = scmp.ne.s32.totalorder %s1981_s16, %s1977_s15 }
   0x9   : > { %s3106_s25 = smov (%p27_p0, %s26_s25), 0  ;;  %s3108_s26 = smov (!%p27_p0, %s29_s26), %s2001_s21 }
   0xa   : > { %s134_s27 = ssub.s32 %s1997_s20, %s3106_s25  ;;  %p2093_p3 = por %p149_p2, %p148_p1 }
   0xb   : > { %p31_p4 = scmp.ge.s32.totalorder %s3108_s26, 2  ;;  %p155_p6 = scmp.eq.s32.totalorder %s1682_s24, 3 }
   0xc   : > { %p1685_p7 = scmp.ge.s32.totalorder %s2005_s22, 1  ;;  %p207_p9 = scmp.lt.s32.totalorder %s2005_s22, 5 }
   0xd   : > { %s3110_s26 = smov (%p31_p4, %s3108_s26), 0  ;;  %p2102_p8 = por %p155_p6, %p154_p5 }
   0xe   : > { %s133_s30 = ssub.s32 %s2001_s21, %s3110_s26  ;;  %s138_s5 = sadd.s32 1, %s1985_s17 }
   0xf   : > { %s135_s6 = sor.u32 %s134_s27, %s133_s30  ;;  %p208_p10 = pnand %p1685_p7, %p207_p9 }
  0x10   : > { %p136_p11 = scmp.eq.s32.totalorder %s135_s6, 0 }
  0x11   : > { %211 = sbr.rel (%p208_p10) target bundleno = 644 (0x284), region = 36 }
  0x12   : > { %s2111_s7 = scalar_select %p136_p11, %s1985_s17, %s138_s5  }
  0x18   : > { %s2114_s8 = sshll.u32 %s1989_s18, 5  ;;  %p248_p12 = scmp.lt.s32.totalorder %s1993_s19, 1  ;;  %vm583_vm0 = vcmask 1046528   ;;  %vm418_vm1 = vsmask.f32 7424  ;;  %vm1198_vm2 = vcmask 1041408  }
  0x19   : > { %p250_p13 = scmp.lt.s32.totalorder %s2114_s8, 95  ;;  %s2007_s18 = smov 12   ;;  %vm881_vm3 = vcmask 31744   ;;  %vm914_vm4 = vcmask 64512   ;;  %vm980_vm5 = vcmask 130048   ;;  %vm947_vm6 = vcmask 97280  }
  0x1a   : > { %s2119_s9 = scalar_select %p248_p12, %s1993_s19, 1  ;;  %vm1013_vm7 = vcmask 162816   ;;  %vm1046_vm8 = vcmask 195584   ;;  %vm1079_vm9 = vcmask 228352   ;;  %vm1112_vm10 = vcmask 261120  }
  0x1b   : > { %s251_s10 = scalar_select %p250_p13, %s2114_s8, 95  ;;  %vm1165_vm11 = vcmask 293888  }
  0x1c   : > { %s1806_s11 = smul.u32 96, %s2119_s9  ;;  %s2008_s27 = smov 8  }
  0x1d   : > { %s2009_s30 = smov 4   ;;  %s1740_s5 = sadd.s32 32, %s2114_s8 }
  0x1e   : > { %s253_s12 = sadd.s32 %s1806_s11, %s251_s10  ;;  %p261_p0 = scmp.lt.s32.totalorder %s1740_s5, 95 }
  0x1f   : > { %s1688_s13 = sshll.u32 %s253_s12, 2  ;;  %s2010_s23 = smov 16  }
  0x20   : > { %s2128_s24 = scalar_lea.vmem %s3074_s0, %s1688_s13  ;;  %s3112_s5 = smov (!%p261_p0, %s1740_s5), 95 }
  0x21   : > { %v2131_v0 = vld [vmem:[%s2128_s24 + $0x50] sm:$0xff]   ;;  %v2141_v2 = vld [vmem:[%s2128_s24 + $0x40] sm:$0xff]   ;;  %v2144_v3 = vld [vmem:[%s2128_s24 + $0x48] sm:$0xff]   ;;  %s264_s6 = sadd.s32 %s1806_s11, %s3112_s5  ;;  %s2011_s9 = smov 20  }
  0x22   : > { %v2134_v1 = vld [vmem:[%s2128_s24 + $0x10] sm:$0xff]   ;;  %665 = vrot.lane.b32.xlu1 %v2131_v0, %s2007_s18  ;;  %v603_v4 = vrot.slane %v2131_v0, 1  ;;  %v599_v5 = vrot.slane %v2141_v2, 1  ;;  %v601_v6 = vrot.slane %v2144_v3, 1  ;;  %v2150_v7 = vld [vmem:[%s2128_s24] sm:$0xff]   ;;  %v2153_v8 = vld [vmem:[%s2128_s24 + $0x8] sm:$0xff]  }
  0x23   : > { %649 = vrot.lane.b32.xlu0 %v2134_v1, %s2007_s18  ;;  %v587_v9 = vrot.slane %v2134_v1, 1  ;;  %v435_v10 = vshll.u32 %v2134_v1, 16  ;;  %v491_v11 = vshll.u32 %v2144_v3, 16  ;;  %v584_v13 = vrot.slane %v2150_v7, 1  ;;  %v2190_v35 = vld [vmem:[%s2128_s24 + $0x58] sm:$0xff]   ;;  %v2206_v43 = vld [vmem:[%s2128_s24 + $0x60] sm:$0xff]  }
  0x24   : > { %v2161_v12 = vsel %vm583_vm0, %v599_v5, %v601_v6  ;;  %v585_v14 = vrot.slane %v2153_v8, 1  ;;  %v495_v15 = vshrl.u32 %v2144_v3, 16  ;;  %v427_v16 = vshll.u32 %v2153_v8, 16  ;;  %v2197_v39 = vld [vmem:[%s2128_s24 + $0x18] sm:$0xff]   ;;  %v2215_v47 = vld [vmem:[%s2128_s24 + $0x20] sm:$0xff]   ;;  %s1690_s10 = sshll.u32 %s264_s6, 2 }
  0x25   : > { %v431_v17 = vshrl.u32 %v2153_v8, 16  ;;  %v420_v18 = vshrl.u32 %v2150_v7, 16  ;;  %v499_v19 = vshll.u32 %v2131_v0, 16  ;;  %v2176_v21 = vsel %vm583_vm0, %v601_v6, %v603_v4  ;;  %s2241_s14 = scalar_lea.vmem %s3075_s1, %s1690_s10  ;;  %s2012_s11 = smov 24  }
  0x26   : > { %633 = vrot.lane.b32.xlu1 %v2161_v12, %s2008_s27  ;;  %v586_v20 = vsel %vm583_vm0, %v584_v13, %v585_v14  ;;  %v422_v22 = vshll.u32 %v2150_v7, 16  ;;  %v493_v23 = vrot.slane %v491_v11, 1  ;;  %v429_v24 = vrot.slane %v427_v16, 1  ;;  %v2279_v16 = vld [vmem:[%s2128_s24 + $0x68] sm:$0xff]   ;;  %s2013_s13 = smov 28   ;;  %s2014_s10 = smov 32  }
  0x27   : > { %617 = vrot.lane.b32.xlu0 %v586_v20, %s2008_s27  ;;  %v437_v25 = vrot.slane %v435_v10, 1  ;;  %v483_v26 = vshll.u32 %v2141_v2, 16  ;;  %v588_v27 = vsel %vm583_vm0, %v585_v14, %v587_v9  ;;  %v487_v29 = vshrl.u32 %v2141_v2, 16  ;;  %v2296_v20 = vld [vmem:[%s2128_s24 + $0x70] sm:$0xff]   ;;  %s1735_s12 = sshll.u32 %s1993_s19, 6 }
  0x28   : > { %v424_v28 = vrot.slane %v422_v22, 1  ;;  %v433_v30 = vor.u32 %v431_v17, %v429_v24  ;;  %v497_v33 = vor.u32 %v495_v15, %v493_v23  ;;  %v501_v34 = vrot.slane %v499_v19, 1  ;;  %v2289_v17 = vld [vmem:[%s2128_s24 + $0x28] sm:$0xff]   ;;  %3088 = vst [vmem:[#allocation6_spill] sm:$0xff] %v2296_v20  ;;  %s1578_s19 = sadd.s32 %s1735_s12, %s2114_s8 }
  0x29   : > { %v2187_v31 = vrot.slane %v483_v26, 1  ;;  %v503_v41 = vshrl.u32 %v2131_v0, 16  ;;  %v507_v42 = vshll.u32 %v2190_v35, 16  ;;  %v439_v44 = vshrl.u32 %v2134_v1, 16  ;;  %3087 = vst [vmem:[#allocation5_spill] sm:$0xff] %v2289_v17  ;;  %s1736_s8 = sshll.u32 %s1578_s19, 7 }
  0x2a   : > { %635 = vrot.lane.b32.xlu1 %v2176_v21, %s2008_s27  ;;  %v425_v32 = vor.u32 %v424_v28, %v420_v18  ;;  %v438_v36 = vsel %vm418_vm1, %v433_v30, %v437_v25  ;;  %v2201_v40 = vsel %vm418_vm1, %v497_v33, %v501_v34  ;;  %v443_v46 = vshll.u32 %v2197_v39, 16 }
  0x2b   : > { %619 = vrot.lane.b32.xlu0 %v588_v27, %s2008_s27  ;;  %v489_v38 = vor.u32 %v487_v29, %v2187_v31  ;;  %v505_v48 = vor.u32 %v503_v41, %v501_v34  ;;  %v509_v49 = vrot.slane %v507_v42, 1  ;;  %v511_v50 = vshrl.u32 %v2190_v35, 16 }
  0x2c   : > { %v430_v37 = vsel %vm418_vm1, %v425_v32, %v429_v24  ;;  %v515_v51 = vshll.u32 %v2206_v43, 16  ;;  %v441_v52 = vor.u32 %v439_v44, %v437_v25  ;;  %v445_v53 = vrot.slane %v443_v46, 1  ;;  %v2303_v24 = vld [vmem:[%s2128_s24 + $0x30] sm:$0xff]   ;;  %v1904_v25 = vld [vmem:[%s3076_s2] sm:$0xff]  }
  0x2d   : > { %v2211_v45 = vsel %vm418_vm1, %v489_v38, %v493_v23  ;;  %v447_v54 = vshrl.u32 %v2197_v39, 16  ;;  %v451_v55 = vshll.u32 %v2215_v47, 16  ;;  %v2229_v56 = vsel %vm418_vm1, %v505_v48, %v509_v49  ;;  %3089 = vst [vmem:[#allocation7_spill] sm:$0xff] %v2303_v24  ;;  %1760 = vmatprep.subr.bf16.mxu0 %v1904_v25  ;;  %1798 = vmatprep.subr.bf16.mxu1 %v1904_v25  ;;  %v1907_v48 = vld [vmem:[%s3076_s2 + $0x10] ss:$0 sps:$4 sm:$0x33]  }
  0x2e   : > { %553 = vrot.lane.b32.xlu1 %v438_v36, %s2009_s30  ;;  %v513_v57 = vor.u32 %v511_v50, %v509_v49  ;;  %v517_v58 = vrot.slane %v515_v51, 1  ;;  %v2236_v59 = vsel %vm418_vm1, %v441_v52, %v445_v53  ;;  %v605_v63 = vrot.slane %v2190_v35, 1  ;;  %1761 = vmatpush3.bf16.msra.mxu0 %v1904_v25  ;;  %v1905_v36 = vld [vmem:[%s3076_s2 + $0x8] sm:$0xff]  }
  0x2f   : > { %551 = vrot.lane.b32.xlu0 %v430_v37, %s2009_s30  ;;  %v449_v60 = vor.u32 %v447_v54, %v445_v53  ;;  %v453_v61 = vrot.slane %v451_v55, 1  ;;  %v589_v6 = vrot.slane %v2197_v39, 1  ;;  %v607_v13 = vrot.slane %v2206_v43, 1  ;;  %1801 = vmatpush3.bf16.msra.mxu1 %v1904_v25 }
  0x30   : > { %v2246_v62 = vsel %vm418_vm1, %v513_v57, %v517_v58  ;;  %v2260_v11 = vsel %vm583_vm0, %v603_v4, %v605_v63  ;;  %v591_v15 = vrot.slane %v2215_v47, 1  ;;  %v519_v18 = vshrl.u32 %v2206_v43, 16  ;;  %1762 = vmatprep.subr.bf16.mxu0 %v1905_v36  ;;  %1799 = vmatprep.subr.bf16.mxu1 %v1905_v36 }
  0x31   : > { %v2253_v10 = vsel %vm418_vm1, %v449_v60, %v453_v61  ;;  %v2268_v14 = vsel %vm583_vm0, %v587_v9, %v589_v6  ;;  %v2276_v4 = vsel %vm583_vm0, %v605_v63, %v607_v13  ;;  %v523_v19 = vshll.u32 %v2279_v16, 16  ;;  %v2420_v63 = vld [vmem:[%s2128_s24 + $0x38] sm:$0xff]  }
  0x32   : > { %569 = vrot.lane.b32.xlu1 %v2201_v40, %s2009_s30  ;;  %v2286_v9 = vsel %vm583_vm0, %v589_v6, %v591_v15  ;;  %v455_v22 = vshrl.u32 %v2215_v47, 16  ;;  %v459_v23 = vshll.u32 %v2289_v17, 16  ;;  %v521_v26 = vor.u32 %v519_v18, %v517_v58  ;;  %1763 = vmatpush3.bf16.msra.mxu0 %v1905_v36  ;;  %3091 = vst [vmem:[#allocation9_spill] sm:$0xff] %v2420_v63 }
  0x33   : > { %567 = vrot.lane.b32.xlu0 %v2211_v45, %s2009_s30  ;;  %v525_v27 = vrot.slane %v523_v19, 1  ;;  %v527_v28 = vshrl.u32 %v2279_v16, 16  ;;  %v531_v29 = vshll.u32 %v2296_v20, 16  ;;  %v463_v33 = vshrl.u32 %v2289_v17, 16  ;;  %1802 = vmatpush3.bf16.msra.mxu1 %v1905_v36 }
  0x34   : > { %v457_v30 = vor.u32 %v455_v22, %v453_v61  ;;  %v461_v32 = vrot.slane %v459_v23, 1  ;;  %v467_v34 = vshll.u32 %v2303_v24, 16  ;;  %v609_v50 = vrot.slane %v2279_v16, 1  ;;  %1804 = vmatprep.subr.msk.bf16.mxu0 %vm1198_vm2, %v1907_v48  ;;  %1805 = vmatprep.subr.msk.bf16.mxu1 %vm1198_vm2, %v1907_v48 }
  0x35   : > { %v2322_v37 = vsel %vm418_vm1, %v521_v26, %v525_v27  ;;  %v529_v38 = vor.u32 %v527_v28, %v525_v27  ;;  %v2324_v41 = vrot.slane %v531_v29, 1  ;;  %v1200_v51 = vsel %vm1198_vm2, %v1907_v48, 0 }
  0x36   : > { %667 = vrot.lane.b32.xlu1 %v2190_v35, %s2007_s18  ;;  %v2329_v42 = vsel %vm418_vm1, %v457_v30, %v461_v32  ;;  %v465_v44 = vor.u32 %v463_v33, %v461_v32  ;;  %v2331_v46 = vrot.slane %v467_v34, 1  ;;  %v593_v53 = vrot.slane %v2289_v17, 1  ;;  %1765 = vmatpush3.bf16.msra.mxu0 %v1200_v51 }
  0x37   : > { %651 = vrot.lane.b32.xlu0 %v2197_v39, %s2007_s18  ;;  %v2340_v49 = vsel %vm418_vm1, %v529_v38, %v2324_v41  ;;  %1803 = vmatpush3.bf16.msra.mxu1 %v1200_v51  ;;  %v2355_v54 = vsel %vm583_vm0, %v607_v13, %v609_v50  ;;  %v611_v57 = vrot.slane %v2296_v20, 1  ;;  %v595_v58 = vrot.slane %v2303_v24, 1  ;;  %v2427_v13 = vld [vmem:[%s2241_s14] sm:$0xff]  }
  0x38   : > { %v2347_v52 = vsel %vm418_vm1, %v465_v44, %v2331_v46  ;;  %v2362_v55 = vsel %vm583_vm0, %v591_v15, %v593_v53  ;;  %v535_v6 = vshrl.u32 %v2296_v20, 16  ;;  %v475_v15 = vshll.u32 %v2420_v63, 16 }
  0x39   : > { %v2373_v60 = vsel %vm583_vm0, %v609_v50, %v611_v57  ;;  %v2378_v61 = vsel %vm583_vm0, %v593_v53, %v595_v58  ;;  %v547_v22 = vshll.u32 %v2427_v13, 16  ;;  %v479_v26 = vshrl.u32 %v2420_v63, 16 }
  0x3a   : > { %713 = vrot.lane.b32.xlu1 %v2229_v56, %s2010_s23  ;;  %v477_v25 = vrot.slane %v475_v15, 1  ;;  %v597_v44 = vrot.slane %v2420_v63, 1 }
  0x3b   : > { %697 = vrot.lane.b32.xlu0 %v2236_v59, %s2010_s23  ;;  %v2447_v29 = vrot.slane %v547_v22, 1 }
  0x3c   : > { %v481_v32 = vor.u32 %v479_v26, %v477_v25  ;;  %v2480_v50 = vsel %vm583_vm0, %v595_v58, %v597_v44 }
  0x3e   : > { %715 = vrot.lane.b32.xlu1 %v2246_v62, %s2010_s23 }
  0x3f   : > { %699 = vrot.lane.b32.xlu0 %v2253_v10, %s2010_s23 }
  0x42   : > { %749 = vrot.lane.b32.xlu1 %v2260_v11, %s2011_s9 }
  0x43   : > { %733 = vrot.lane.b32.xlu0 %v2268_v14, %s2011_s9 }
  0x46   : > { %751 = vrot.lane.b32.xlu1 %v2276_v4, %s2011_s9 }
  0x47   : > { %735 = vrot.lane.b32.xlu0 %v2286_v9, %s2011_s9 }
  0x4a   : > { %781 = vrot.lane.b32.xlu1 %v2206_v43, %s2012_s11 }
  0x4b   : > { %765 = vrot.lane.b32.xlu0 %v2215_v47, %s2012_s11 }
  0x4e   : > { %783 = vrot.lane.b32.xlu1 %v2279_v16, %s2012_s11 }
  0x4f   : > { %767 = vrot.lane.b32.xlu0 %v2289_v17, %s2012_s11 }
  0x52   : > { %829 = vrot.lane.b32.xlu1 %v2322_v37, %s2013_s13 }
  0x53   : > { %813 = vrot.lane.b32.xlu0 %v2329_v42, %s2013_s13 }
  0x56   : > { %831 = vrot.lane.b32.xlu1 %v2340_v49, %s2013_s13 }
  0x57   : > { %815 = vrot.lane.b32.xlu0 %v2347_v52, %s2013_s13 }
  0x5a   : > { %865 = vrot.lane.b32.xlu1 %v2355_v54, %s2014_s10 }
  0x5b   : > { %849 = vrot.lane.b32.xlu0 %v2362_v55, %s2014_s10 }
  0x5e   : > { %571 = vrot.lane.b32.xlu1 %v2229_v56, %s2009_s30 }
  0x5f   : > { %555 = vrot.lane.b32.xlu0 %v2236_v59, %s2009_s30  ;;  %v2415_v59 = vld [vmem:[%s2128_s24 + $0x78] sm:$0xff]  }
  0x60   : > { %3090 = vst [vmem:[#allocation8_spill] sm:$0xff] %v2415_v59  ;;  %v543_v19 = vshrl.u32 %v2415_v59, 16  ;;  %v613_v36 = vrot.slane %v2415_v59, 1 }
  0x62   : > { %867 = vrot.lane.b32.xlu1 %v2373_v60, %s2014_s10 }
  0x63   : > { %851 = vrot.lane.b32.xlu0 %v2378_v61, %s2014_s10 }
  0x66   : > { %573 = vrot.lane.b32.xlu1 %v2246_v62, %s2009_s30 }
  0x67   : > { %557 = vrot.lane.b32.xlu0 %v2253_v10, %s2009_s30  ;;  %v539_v10 = vshll.u32 %v2415_v59, 16 }
  0x69   : > { %v541_v18 = vrot.slane %v539_v10, 1  ;;  %v2505_v10 = vsel %vm583_vm0, %v597_v44, %v599_v5 }
  0x6a   : > { %637 = vrot.lane.b32.xlu1 %v2260_v11, %s2008_s27 }
  0x6b   : > { %621 = vrot.lane.b32.xlu0 %v2268_v14, %s2008_s27  ;;  %v471_v14 = vshrl.u32 %v2303_v24, 16  ;;  %v545_v28 = vor.u32 %v543_v19, %v541_v18 }
  0x6d   : > { %v473_v23 = vor.u32 %v471_v14, %v2331_v46  ;;  %v2460_v34 = vsel %vm418_vm1, %v545_v28, %v2447_v29  ;;  %v2475_v46 = vsel %vm583_vm0, %v611_v57, %v613_v36  ;;  %v2562_v28 = vld [vmem:[%s2241_s14 + $0x8] sm:$0xff]  }
  0x6e   : > { %639 = vrot.lane.b32.xlu1 %v2276_v4, %s2008_s27 }
  0x6f   : > { %623 = vrot.lane.b32.xlu0 %v2286_v9, %s2008_s27  ;;  %v537_v9 = vor.u32 %v535_v6, %v2324_v41  ;;  %v2452_v30 = vsel %vm418_vm1, %v473_v23, %v477_v25  ;;  %v2469_v41 = vsel %vm418_vm1, %v481_v32, %v2187_v31  ;;  %v3079_v31 = vrot.slane %v2427_v13, 1 }
  0x71   : > { %v2445_v27 = vsel %vm418_vm1, %v537_v9, %v541_v18  ;;  %v2496_v58 = vsel %vm583_vm0, %v613_v36, %v3079_v31  ;;  %v681_v31 = vshrl.u32 %v2427_v13, 16 }
  0x72   : > { %669 = vrot.lane.b32.xlu1 %v2206_v43, %s2007_s18 }
  0x73   : > { %653 = vrot.lane.b32.xlu0 %v2215_v47, %s2007_s18 }
  0x76   : > { %671 = vrot.lane.b32.xlu1 %v2279_v16, %s2007_s18 }
  0x77   : > { %655 = vrot.lane.b32.xlu0 %v2289_v17, %s2007_s18 }
  0x7a   : > { %717 = vrot.lane.b32.xlu1 %v2322_v37, %s2010_s23 }
  0x7b   : > { %701 = vrot.lane.b32.xlu0 %v2329_v42, %s2010_s23 }
  0x7e   : > { %719 = vrot.lane.b32.xlu1 %v2340_v49, %s2010_s23 }
  0x7f   : > { %703 = vrot.lane.b32.xlu0 %v2347_v52, %s2010_s23 }
  0x82   : > { %753 = vrot.lane.b32.xlu1 %v2355_v54, %s2011_s9 }
  0x83   : > { %737 = vrot.lane.b32.xlu0 %v2362_v55, %s2011_s9 }
  0x86   : > { %755 = vrot.lane.b32.xlu1 %v2373_v60, %s2011_s9 }
  0x87   : > { %739 = vrot.lane.b32.xlu0 %v2378_v61, %s2011_s9 }
  0x8a   : > { %785 = vrot.lane.b32.xlu1 %v2296_v20, %s2012_s11 }
  0x8b   : > { %769 = vrot.lane.b32.xlu0 %v2303_v24, %s2012_s11 }
  0x8e   : > { %787 = vrot.lane.b32.xlu1 %v2415_v59, %s2012_s11 }
  0x8f   : > { %771 = vrot.lane.b32.xlu0 %v2420_v63, %s2012_s11 }
  0x92   : > { %833 = vrot.lane.b32.xlu1 %v2445_v27, %s2013_s13 }
  0x93   : > { %817 = vrot.lane.b32.xlu0 %v2452_v30, %s2013_s13 }
  0x94   : > { %v2456_v33 = vpop.permute.xlu1 %665 }
  0x95   : > { %v2465_v38 = vpop.permute.xlu0 %649 }
  0x96   : > { %835 = vrot.lane.b32.xlu1 %v2460_v34, %s2013_s13 }
  0x97   : > { %819 = vrot.lane.b32.xlu0 %v2469_v41, %s2013_s13 }
  0x98   : > { %v634_v48 = vpop.permute.xlu1 %633 }
  0x99   : > { %v618_v51 = vpop.permute.xlu0 %617 }
  0x9a   : > { %869 = vrot.lane.b32.xlu1 %v2475_v46, %s2014_s10 }
  0x9b   : > { %853 = vrot.lane.b32.xlu0 %v2480_v50, %s2014_s10 }
  0x9c   : > { %v2487_v53 = vpop.permute.xlu1 %635 }
  0x9d   : > { %v2489_v57 = vpop.permute.xlu0 %619 }
  0x9e   : > { %575 = vrot.lane.b32.xlu1 %v2322_v37, %s2009_s30 }
  0x9f   : > { %559 = vrot.lane.b32.xlu0 %v2329_v42, %s2009_s30 }
  0xa0   : > { %v2500_v6 = vpop.permute.xlu1 %553 }
  0xa1   : > { %v552_v14 = vpop.permute.xlu0 %551 }
  0xa2   : > { %871 = vrot.lane.b32.xlu1 %v2496_v58, %s2014_s10  ;;  %v883_v32 = vsel %vm881_vm3, %v2150_v7, %v552_v14  ;;  %v2575_v7 = vld [vmem:[%s2241_s14 + $0x10] sm:$0xff]  }
  0xa3   : > { %855 = vrot.lane.b32.xlu0 %v2505_v10, %s2014_s10 }
  0xa4   : > { %v2511_v37 = vpop.permute.xlu1 %569 }
  0xa5   : > { %v568_v15 = vpop.permute.xlu0 %567 }
  0xa6   : > { %577 = vrot.lane.b32.xlu1 %v2340_v49, %s2009_s30  ;;  %v899_v25 = vsel %vm881_vm3, %v2141_v2, %v568_v15 }
  0xa7   : > { %561 = vrot.lane.b32.xlu0 %v2347_v52, %s2009_s30  ;;  %v932_v44 = vsel %vm914_vm4, %v899_v25, %v634_v48 }
  0xa8   : > { %v2517_v42 = vpop.permute.xlu1 %667  ;;  %v965_v14 = vsel %vm947_vm6, %v932_v44, %v2456_v33  ;;  %v683_v33 = vor.u32 %v681_v31, %v2447_v29 }
  0xa9   : > { %v2519_v5 = vpop.permute.xlu0 %651 }
  0xaa   : > { %641 = vrot.lane.b32.xlu1 %v2355_v54, %s2008_s27 }
  0xab   : > { %625 = vrot.lane.b32.xlu0 %v2362_v55, %s2008_s27 }
  0xac   : > { %v714_v9 = vpop.permute.xlu1 %713 }
  0xad   : > { %v698_v18 = vpop.permute.xlu0 %697  ;;  %v998_v25 = vsel %vm980_vm5, %v965_v14, %v714_v9  ;;  %v689_v9 = vshrl.u32 %v2562_v28, 16  ;;  %v693_v14 = vshll.u32 %v2575_v7, 16 }
  0xae   : > { %643 = vrot.lane.b32.xlu1 %v2373_v60, %s2008_s27 }
  0xaf   : > { %627 = vrot.lane.b32.xlu0 %v2378_v61, %s2008_s27 }
  0xb0   : > { %v2529_v49 = vpop.permute.xlu1 %715 }
  0xb1   : > { %v2531_v52 = vpop.permute.xlu0 %699 }
  0xb2   : > { %673 = vrot.lane.b32.xlu1 %v2296_v20, %s2007_s18 }
  0xb3   : > { %657 = vrot.lane.b32.xlu0 %v2303_v24, %s2007_s18 }
  0xb4   : > { %v750_v54 = vpop.permute.xlu1 %749 }
  0xb5   : > { %v734_v55 = vpop.permute.xlu0 %733 }
  0xb6   : > { %675 = vrot.lane.b32.xlu1 %v2415_v59, %s2007_s18  ;;  %v916_v59 = vsel %vm914_vm4, %v883_v32, %v618_v51  ;;  %v1031_v32 = vsel %vm1013_vm7, %v998_v25, %v750_v54 }
  0xb7   : > { %659 = vrot.lane.b32.xlu0 %v2420_v63, %s2007_s18  ;;  %v685_v63 = vshll.u32 %v2562_v28, 16  ;;  %v949_v51 = vsel %vm947_vm6, %v916_v59, %v2465_v38  ;;  %v901_v59 = vsel %vm881_vm3, %v2144_v3, %v2511_v37 }
  0xb8   : > { %v2541_v60 = vpop.permute.xlu1 %751  ;;  %v982_v20 = vsel %vm980_vm5, %v949_v51, %v698_v18  ;;  %v885_v18 = vsel %vm881_vm3, %v2153_v8, %v2500_v6 }
  0xb9   : > { %v2543_v61 = vpop.permute.xlu0 %735  ;;  %v687_v44 = vrot.slane %v685_v63, 1  ;;  %v1015_v38 = vsel %vm1013_vm7, %v982_v20, %v734_v55  ;;  %v934_v20 = vsel %vm914_vm4, %v901_v59, %v2487_v53 }
  0xba   : > { %721 = vrot.lane.b32.xlu1 %v2445_v27, %s2010_s23  ;;  %v967_v8 = vsel %vm947_vm6, %v934_v20, %v2517_v42 }
  0xbb   : > { %705 = vrot.lane.b32.xlu0 %v2452_v30, %s2010_s23  ;;  %v691_v55 = vor.u32 %v689_v9, %v687_v44  ;;  %v1000_v53 = vsel %vm980_vm5, %v967_v8, %v2529_v49 }
  0xbc   : > { %v782_v19 = vpop.permute.xlu1 %781  ;;  %v1033_v51 = vsel %vm1013_vm7, %v1000_v53, %v2541_v60 }
  0xbd   : > { %v766_v22 = vpop.permute.xlu0 %765  ;;  %v1064_v17 = vsel %vm1046_vm8, %v1031_v32, %v782_v19 }
  0xbe   : > { %723 = vrot.lane.b32.xlu1 %v2460_v34, %s2010_s23  ;;  %v1048_v29 = vsel %vm1046_vm8, %v1015_v38, %v766_v22  ;;  %v2614_v22 = vrot.slane %v693_v14, 1 }
  0xbf   : > { %707 = vrot.lane.b32.xlu0 %v2469_v41, %s2010_s23 }
  0xc0   : > { %v2553_v23 = vpop.permute.xlu1 %783  ;;  %v696_v49 = vsel %vm418_vm1, %v691_v55, %v2614_v22 }
  0xc1   : > { %v2557_v26 = vpop.permute.xlu0 %767 }
  0xc2   : > { %757 = vrot.lane.b32.xlu1 %v2475_v46, %s2011_s9 }
  0xc3   : > { %741 = vrot.lane.b32.xlu0 %v2480_v50, %s2011_s9 }
  0xc4   : > { %v830_v36 = vpop.permute.xlu1 %829 }
  0xc5   : > { %v814_v15 = vpop.permute.xlu0 %813  ;;  %v1097_v54 = vsel %vm1079_vm9, %v1064_v17, %v830_v36  ;;  %v2609_v17 = vsel %vm418_vm1, %v683_v33, %v687_v44  ;;  %v918_v36 = vsel %vm914_vm4, %v885_v18, %v2489_v57  ;;  %v1066_v57 = vsel %vm1046_vm8, %v1033_v51, %v2553_v23 }
  0xc6   : > { %759 = vrot.lane.b32.xlu1 %v2496_v58, %s2011_s9  ;;  %v1081_v19 = vsel %vm1079_vm9, %v1048_v29, %v814_v15  ;;  %v951_v15 = vsel %vm947_vm6, %v918_v36, %v2519_v5  ;;  %v729_v33 = vrot.slane %v2562_v28, 1 }
  0xc7   : > { %743 = vrot.lane.b32.xlu0 %v2505_v10, %s2011_s9  ;;  %v984_v32 = vsel %vm980_vm5, %v951_v15, %v2531_v52  ;;  %v2735_v15 = vld [vmem:[%s2241_s14 + $0x20] sm:$0xff]  }
  0xc8   : > { %v832_v48 = vpop.permute.xlu1 %831  ;;  %v1017_v5 = vsel %vm1013_vm7, %v984_v32, %v2543_v61 }
  0xc9   : > { %v816_v24 = vpop.permute.xlu0 %815  ;;  %v1099_v60 = vsel %vm1079_vm9, %v1066_v57, %v832_v48  ;;  %v1050_v52 = vsel %vm1046_vm8, %v1017_v5, %v2557_v26  ;;  %v3092_v48 = vrot.slane %v2427_v13, 1 }
  0xca   : > { %789 = vrot.lane.b32.xlu1 %v2427_v13, %s2012_s11  ;;  %v1083_v23 = vsel %vm1079_vm9, %v1050_v52, %v816_v24  ;;  %v731_v24 = vrot.slane %v2575_v7, 1  ;;  %v809_v52 = vshll.u32 %v2735_v15, 16 }
  0xcb   : > { %773 = vrot.lane.b32.xlu0 %v2141_v2, %s2012_s11  ;;  %v730_v59 = vsel %vm583_vm0, %v3092_v48, %v729_v33 }
  0xcc   : > { %v866_v63 = vpop.permute.xlu1 %865  ;;  %v732_v29 = vsel %vm583_vm0, %v729_v33, %v731_v24 }
  0xcd   : > { %v1130_v31 = vsel %vm1112_vm10, %v1097_v54, %v866_v63  ;;  %v850_v25 = vpop.permute.xlu0 %849 }
  0xce   : > { %791 = vrot.lane.b32.xlu1 %v2562_v28, %s2012_s11  ;;  %1782 = vmatprep.mubr.msk.bf16.mxu1 %vm1165_vm11, %v1130_v31  ;;  %v1114_v37 = vsel %vm1112_vm10, %v1081_v19, %v850_v25 }
  0xcf   : > { %775 = vrot.lane.b32.xlu0 %v2144_v3, %s2012_s11  ;;  %1766 = vmatprep.mubr.msk.bf16.mxu0 %vm1165_vm11, %v1114_v37 }
  0xd0   : > { %v2621_v6 = vpop.permute.xlu1 %571 }
  0xd1   : > { %v2631_v42 = vpop.permute.xlu0 %555 }
  0xd2   : > { %837 = vrot.lane.b32.xlu1 %v2609_v17, %s2013_s13 }
  0xd3   : > { %821 = vrot.lane.b32.xlu0 %v2211_v45, %s2013_s13 }
  0xd4   : > { %v868_v44 = vpop.permute.xlu1 %867 }
  0xd5   : > { %v1132_v9 = vsel %vm1112_vm10, %v1099_v60, %v868_v44  ;;  %v852_v14 = vpop.permute.xlu0 %851 }
  0xd6   : > { %839 = vrot.lane.b32.xlu1 %v696_v49, %s2013_s13  ;;  %1783 = vmatmul.mubr.msk.bf16.vlgmr.msra.gmra.mrb[0].mxu1 %vm1165_vm11, %v1132_v9  ;;  %v1116_v61 = vsel %vm1112_vm10, %v1083_v23, %v852_v14 }
  0xd7   : > { %823 = vrot.lane.b32.xlu0 %v2201_v40, %s2013_s13  ;;  %1767 = vmatmul.mubr.msk.bf16.vlgmr.msra.gmra.mrb[0].mxu0 %vm1165_vm11, %v1116_v61 }
  0xd8   : > { %v2660_v26 = vpop.permute.xlu1 %573 }
  0xd9   : > { %v2662_v38 = vpop.permute.xlu0 %557  ;;  %v905_v48 = vsel %vm881_vm3, %v2190_v35, %v2660_v26 }
  0xda   : > { %873 = vrot.lane.b32.xlu1 %v730_v59, %s2014_s10  ;;  %v889_v26 = vsel %vm881_vm3, %v2197_v39, %v2662_v38 }
  0xdb   : > { %857 = vrot.lane.b32.xlu0 %v2161_v12, %s2014_s10 }
  0xdc   : > { %v638_v54 = vpop.permute.xlu1 %637 }
  0xdd   : > { %v622_v63 = vpop.permute.xlu0 %621 }
  0xde   : > { %579 = vrot.lane.b32.xlu1 %v2445_v27, %s2009_s30 }
  0xdf   : > { %563 = vrot.lane.b32.xlu0 %v2452_v30, %s2009_s30 }
  0xe0   : > { %v2675_v31 = vpop.permute.xlu1 %639 }
  0xe1   : > { %v2677_v18 = vpop.permute.xlu0 %623 }
  0xe2   : > { %875 = vrot.lane.b32.xlu1 %v732_v29, %s2014_s10 }
  0xe3   : > { %859 = vrot.lane.b32.xlu0 %v2176_v21, %s2014_s10 }
  0xe4   : > { %v670_v19 = vpop.permute.xlu1 %669 }
  0xe5   : > { %v654_v25 = vpop.permute.xlu0 %653 }
  0xe6   : > { %581 = vrot.lane.b32.xlu1 %v2460_v34, %s2009_s30 }
  0xe7   : > { %565 = vrot.lane.b32.xlu0 %v2469_v41, %s2009_s30  ;;  %s244_s30 = sand.u32 1, %s1981_s16  }
  0xe8   : > { %v2686_v27 = vpop.permute.xlu1 %671  ;;  %s3021_s24 = scalar_lea.sflag [#allocation3], %s244_s30 }
  0xe9   : > { %v2688_v30 = vpop.permute.xlu0 %655 }
  0xea   : > { %645 = vrot.lane.b32.xlu1 %v2475_v46, %s2008_s27 }
  0xeb   : > { %629 = vrot.lane.b32.xlu0 %v2480_v50, %s2008_s27 }
  0xec   : > { %v718_v20 = vpop.permute.xlu1 %717 }
  0xed   : > { %v702_v37 = vpop.permute.xlu0 %701 }
  0xee   : > { %647 = vrot.lane.b32.xlu1 %v2496_v58, %s2008_s27 }
  0xef   : > { %631 = vrot.lane.b32.xlu0 %v2505_v10, %s2008_s27 }
  0xf0   : > { %v2698_v34 = vpop.permute.xlu1 %719 }
  0xf1   : > { %v2700_v41 = vpop.permute.xlu0 %703 }
  0xf2   : > { %677 = vrot.lane.b32.xlu1 %v2427_v13, %s2007_s18 }
  0xf3   : > { %661 = vrot.lane.b32.xlu0 %v2141_v2, %s2007_s18 }
  0xf4   : > { %v754_v46 = vpop.permute.xlu1 %753 }
  0xf5   : > { %v738_v50 = vpop.permute.xlu0 %737 }
  0xf6   : > { %679 = vrot.lane.b32.xlu1 %v2562_v28, %s2007_s18 }
  0xf7   : > { %663 = vrot.lane.b32.xlu0 %v2144_v3, %s2007_s18  ;;  %v2723_v3 = vld [vmem:[%s2241_s14 + $0x18] sm:$0xff]   ;;  %s2015_s14 = smov [#allocation2]  }
  0xf8   : > { %v756_v58 = vpop.permute.xlu1 %755  ;;  %v801_v36 = vshll.u32 %v2723_v3, 16  ;;  %v805_v44 = vshrl.u32 %v2723_v3, 16 }
  0xf9   : > { %v2710_v10 = vpop.permute.xlu0 %739 }
  0xfa   : > { %725 = vrot.lane.b32.xlu1 %v2609_v17, %s2010_s23 }
  0xfb   : > { %709 = vrot.lane.b32.xlu0 %v2211_v45, %s2010_s23  ;;  %v903_v45 = vsel %vm881_vm3, %v2131_v0, %v2621_v6 }
  0xfc   : > { %v786_v13 = vpop.permute.xlu1 %785  ;;  %v936_v53 = vsel %vm914_vm4, %v903_v45, %v638_v54 }
  0xfd   : > { %v770_v2 = vpop.permute.xlu0 %769  ;;  %v969_v51 = vsel %vm947_vm6, %v936_v53, %v670_v19 }
  0xfe   : > { %727 = vrot.lane.b32.xlu1 %v696_v49, %s2010_s23  ;;  %v1002_v57 = vsel %vm980_vm5, %v969_v51, %v718_v20 }
  0xff   : > { %711 = vrot.lane.b32.xlu0 %v2201_v40, %s2010_s23  ;;  %v797_v40 = vshrl.u32 %v2575_v7, 16  ;;  %v1035_v33 = vsel %vm1013_vm7, %v1002_v57, %v754_v46  ;;  %s1915_s23 = sshll.u32 %s2015_s14, 4  ;;  %s1916_s23 = int_to_ptr.vmem [resolvable:$false] %s1915_s23 }
 0x100   : > { %v788_v28 = vpop.permute.xlu1 %787 }
 0x101   : > { %v2719_v55 = vpop.permute.xlu0 %771 }
 0x102   : > { %761 = vrot.lane.b32.xlu1 %v730_v59, %s2011_s9 }
 0x103   : > { %745 = vrot.lane.b32.xlu0 %v2161_v12, %s2011_s9  ;;  %v887_v12 = vsel %vm881_vm3, %v2134_v1, %v2631_v42  ;;  %v799_v1 = vor.u32 %v797_v40, %v2614_v22  ;;  %v803_v42 = vrot.slane %v801_v36, 1 }
 0x104   : > { %v834_v17 = vpop.permute.xlu1 %833  ;;  %v920_v32 = vsel %vm914_vm4, %v887_v12, %v622_v63 }
 0x105   : > { %v818_v8 = vpop.permute.xlu0 %817  ;;  %v953_v49 = vsel %vm947_vm6, %v920_v32, %v654_v25  ;;  %v804_v63 = vsel %vm418_vm1, %v799_v1, %v803_v42  ;;  %v807_v19 = vor.u32 %v805_v44, %v803_v42  ;;  %v811_v25 = vrot.slane %v809_v52, 1 }
 0x106   : > { %763 = vrot.lane.b32.xlu1 %v732_v29, %s2011_s9  ;;  %v986_v60 = vsel %vm980_vm5, %v953_v49, %v702_v37 }
 0x107   : > { %747 = vrot.lane.b32.xlu0 %v2176_v21, %s2011_s9  ;;  %v1068_v21 = vsel %vm1046_vm8, %v1035_v33, %v786_v13  ;;  %v1019_v9 = vsel %vm1013_vm7, %v986_v60, %v738_v50  ;;  %v812_v13 = vsel %vm418_vm1, %v807_v19, %v811_v25  ;;  %s1686_s9 = sshll.u32 %s244_s30, 8 }
 0x108   : > { %v836_v6 = vpop.permute.xlu1 %835  ;;  %v1101_v23 = vsel %vm1079_vm9, %v1068_v21, %v834_v17  ;;  %v1052_v61 = vsel %vm1046_vm8, %v1019_v9, %v770_v2 }
 0x109   : > { %v820_v5 = vpop.permute.xlu0 %819  ;;  %v1085_v59 = vsel %vm1079_vm9, %v1052_v61, %v818_v8 }
 0x10a   : > { %793 = vrot.lane.b32.xlu1 %v2575_v7, %s2012_s11 }
 0x10b   : > { %777 = vrot.lane.b32.xlu0 %v2131_v0, %s2012_s11  ;;  %v938_v0 = vsel %vm914_vm4, %v905_v48, %v2675_v31  ;;  %v922_v31 = vsel %vm914_vm4, %v889_v26, %v2677_v18  ;;  %v845_v18 = vrot.slane %v2723_v3, 1 }
 0x10c   : > { %v870_v14 = vpop.permute.xlu1 %869  ;;  %v971_v20 = vsel %vm947_vm6, %v938_v0, %v2686_v27  ;;  %v955_v50 = vsel %vm947_vm6, %v922_v31, %v2688_v30 }
 0x10d   : > { %v1134_v22 = vsel %vm1112_vm10, %v1101_v23, %v870_v14  ;;  %v854_v54 = vpop.permute.xlu0 %853  ;;  %v1004_v46 = vsel %vm980_vm5, %v971_v20, %v2698_v34 }
 0x10e   : > { %795 = vrot.lane.b32.xlu1 %v2723_v3, %s2012_s11  ;;  %1786 = vmatprep.mubr.msk.bf16.mxu1 %vm1165_vm11, %v1134_v22  ;;  %v1118_v29 = vsel %vm1112_vm10, %v1085_v59, %v854_v54  ;;  %v1037_v39 = vsel %vm1013_vm7, %v1004_v46, %v756_v58  ;;  %v846_v3 = vsel %vm583_vm0, %v731_v24, %v845_v18 }
 0x10f   : > { %779 = vrot.lane.b32.xlu0 %v2190_v35, %s2012_s11  ;;  %1770 = vmatprep.mubr.msk.bf16.mxu0 %vm1165_vm11, %v1118_v29  ;;  %v988_v35 = vsel %vm980_vm5, %v955_v50, %v2700_v41  ;;  %v1070_v27 = vsel %vm1046_vm8, %v1037_v39, %v788_v28  ;;  %v3093_v39 = vld [vmem:[#allocation5_spill] sm:$0xff]  ;;  %s2924_s11 = scalar_lea.vmem [#allocation2], %s1686_s9  ;;  %s1917_s9 = scalar_lea.vmem %s1916_s23, 8192 }
 0x110   : > { %v576_v37 = vpop.permute.xlu1 %575  ;;  %v1021_v34 = vsel %vm1013_vm7, %v988_v35, %v2710_v10  ;;  %v1103_v2 = vsel %vm1079_vm9, %v1070_v27, %v836_v6 }
 0x111   : > { %v560_v38 = vpop.permute.xlu0 %559  ;;  %v1054_v58 = vsel %vm1046_vm8, %v1021_v34, %v2719_v55 }
 0x112   : > { %841 = vrot.lane.b32.xlu1 %v804_v63, %s2013_s13  ;;  %v1087_v28 = vsel %vm1079_vm9, %v1054_v58, %v820_v5  ;;  %v891_v23 = vsel %vm881_vm3, %v2215_v47, %v560_v38 }
 0x113   : > { %825 = vrot.lane.b32.xlu0 %v2229_v56, %s2013_s13  ;;  %v847_v56 = vrot.slane %v2735_v15, 1 }
 0x114   : > { %v872_v30 = vpop.permute.xlu1 %871 }
 0x115   : > { %v1136_v41 = vsel %vm1112_vm10, %v1103_v2, %v872_v30  ;;  %v856_v17 = vpop.permute.xlu0 %855  ;;  %v848_v8 = vsel %vm583_vm0, %v845_v18, %v847_v56 }
 0x116   : > { %843 = vrot.lane.b32.xlu1 %v812_v13, %s2013_s13  ;;  %1787 = vmatmul.mubr.msk.bf16.gmra.mrb[4].mxu1 %vm1165_vm11, %v1136_v41  ;;  %v1120_v10 = vsel %vm1112_vm10, %v1087_v28, %v856_v17 }
 0x117   : > { %827 = vrot.lane.b32.xlu0 %v2246_v62, %s2013_s13  ;;  %1771 = vmatmul.mubr.msk.bf16.gmra.mrb[4].mxu0 %vm1165_vm11, %v1120_v10  ;;  %s1581_s13 = sshll.u32 %s2924_s11, 4  ;;  %s3016_s13 = int_to_ptr.vmem [resolvable:$true] %s1581_s13 }
 0x118   : > { %v578_v55 = vpop.permute.xlu1 %577  ;;  %s1911_s18 = scalar_lea.vmem %s3016_s13, 4096  ;;  %p1918_p5 = scmp.lt.s32.totalorder %s3016_s13, %s1916_s23 }
 0x119   : > { %v562_v45 = vpop.permute.xlu0 %561  ;;  %v909_v20 = vsel %vm881_vm3, %v2279_v16, %v578_v55  ;;  %p1912_p1 = scmp.ne.s32.totalorder %s3016_s13, %s1911_s18  ;;  %p1919_p6 = scmp.lt.s32.totalorder %s1917_s9, %s1911_s18 }
 0x11a   : > { %877 = vrot.lane.b32.xlu1 %v846_v3, %s2014_s10  ;;  %v893_v38 = vsel %vm881_vm3, %v3093_v39, %v562_v45 }
 0x11b   : > { %861 = vrot.lane.b32.xlu0 %v2260_v11, %s2014_s10  ;;  %p1913_p2 = pnand %p1912_p1, %p2093_p3  ;;  %p1920_p7 = por %p1919_p6, %p1918_p5 }
 0x11c   : > { %v642_v40 = vpop.permute.xlu1 %641 }
 0x11d   : > { %v626_v7 = vpop.permute.xlu0 %625  ;;  %p1914_p4 = pneg %p1913_p2 }
 0x11e   : > { %879 = vrot.lane.b32.xlu1 %v848_v8, %s2014_s10  ;;  %v924_v22 = vsel %vm914_vm4, %v891_v23, %v626_v7 }
 0x11f   : > { %863 = vrot.lane.b32.xlu0 %v2276_v4, %s2014_s10  ;;  %v907_v4 = vsel %vm881_vm3, %v2206_v43, %v576_v37  ;;  %s3013_s10 = scalar_lea.hbm %s3078_s4, %s1736_s8  ;;  %p1921_p9 = pnand %p1920_p7, %p1914_p4 }
 0x120   : > { %v644_v24 = vpop.permute.xlu1 %643  ;;  %v940_v9 = vsel %vm914_vm4, %v907_v4, %v642_v40 }
 0x121   : > { %v628_v62 = vpop.permute.xlu0 %627  ;;  %v942_v46 = vsel %vm914_vm4, %v909_v20, %v644_v24 }
 0x122   : > { %v926_v13 = vsel %vm914_vm4, %v893_v38, %v628_v62 }
 0x124   : > { %v674_v36 = vpop.permute.xlu1 %673 }
 0x125   : > { %v658_v53 = vpop.permute.xlu0 %657  ;;  %v973_v14 = vsel %vm947_vm6, %v940_v9, %v674_v36 }
 0x126   : > { %v957_v59 = vsel %vm947_vm6, %v924_v22, %v658_v53 }
 0x128   : > { %v676_v15 = vpop.permute.xlu1 %675 }
 0x129   : > { %v660_v12 = vpop.permute.xlu0 %659  ;;  %v975_v35 = vsel %vm947_vm6, %v942_v46, %v676_v15 }
 0x12a   : > { %v959_v18 = vsel %vm947_vm6, %v926_v13, %v660_v12 }
 0x12c   : > { %v722_v51 = vpop.permute.xlu1 %721 }
 0x12d   : > { %v706_v6 = vpop.permute.xlu0 %705  ;;  %v1006_v48 = vsel %vm980_vm5, %v973_v14, %v722_v51 }
 0x12e   : > { %v990_v43 = vsel %vm980_vm5, %v957_v59, %v706_v6 }
 0x130   : > { %v724_v32 = vpop.permute.xlu1 %723 }
 0x131   : > { %v708_v57 = vpop.permute.xlu0 %707  ;;  %v1008_v16 = vsel %vm980_vm5, %v975_v35, %v724_v32 }
 0x132   : > { %v992_v30 = vsel %vm980_vm5, %v959_v18, %v708_v57 }
 0x134   : > { %v758_v49 = vpop.permute.xlu1 %757 }
 0x135   : > { %v742_v33 = vpop.permute.xlu0 %741  ;;  %v1039_v54 = vsel %vm1013_vm7, %v1006_v48, %v758_v49 }
 0x136   : > { %v1023_v29 = vsel %vm1013_vm7, %v990_v43, %v742_v33  ;;  %v3096_v43 = vld [vmem:[#allocation8_spill] sm:$0xff] }
 0x138   : > { %v760_v11 = vpop.permute.xlu1 %759 }
 0x139   : > { %v744_v5 = vpop.permute.xlu0 %743  ;;  %v1041_v34 = vsel %vm1013_vm7, %v1008_v16, %v760_v11 }
 0x13a   : > { %v1025_v41 = vsel %vm1013_vm7, %v992_v30, %v744_v5 }
 0x13c   : > { %v790_v1 = vpop.permute.xlu1 %789 }
 0x13d   : > { %v774_v42 = vpop.permute.xlu0 %773  ;;  %v1072_v0 = vsel %vm1046_vm8, %v1039_v54, %v790_v1 }
 0x13e   : > { %v1056_v25 = vsel %vm1046_vm8, %v1023_v29, %v774_v42 }
 0x140   : > { %v792_v60 = vpop.permute.xlu1 %791 }
 0x141   : > { %v776_v21 = vpop.permute.xlu0 %775  ;;  %v1074_v58 = vsel %vm1046_vm8, %v1041_v34, %v792_v60 }
 0x142   : > { %v1058_v10 = vsel %vm1046_vm8, %v1025_v41, %v776_v21 }
 0x144   : > { %v838_v44 = vpop.permute.xlu1 %837 }
 0x145   : > { %v822_v52 = vpop.permute.xlu0 %821  ;;  %v1105_v47 = vsel %vm1079_vm9, %v1072_v0, %v838_v44 }
 0x146   : > { %v1089_v37 = vsel %vm1079_vm9, %v1056_v25, %v822_v52  ;;  %v3094_v52 = vld [vmem:[#allocation6_spill] sm:$0xff] }
 0x148   : > { %v840_v61 = vpop.permute.xlu1 %839 }
 0x149   : > { %v824_v63 = vpop.permute.xlu0 %823  ;;  %v1107_v28 = vsel %vm1079_vm9, %v1074_v58, %v840_v61  ;;  %v3095_v61 = vld [vmem:[#allocation7_spill] sm:$0xff] }
 0x14a   : > { %v1091_v56 = vsel %vm1079_vm9, %v1058_v10, %v824_v63 }
 0x14c   : > { %v874_v19 = vpop.permute.xlu1 %873 }
 0x14d   : > { %v1138_v26 = vsel %vm1112_vm10, %v1105_v47, %v874_v19  ;;  %v858_v31 = vpop.permute.xlu0 %857 }
 0x14e   : > { %1790 = vmatprep.mubr.msk.bf16.mxu1 %vm1165_vm11, %v1138_v26  ;;  %v1122_v50 = vsel %vm1112_vm10, %v1089_v37, %v858_v31  ;;  %v3097_v37 = vld [vmem:[#allocation9_spill] sm:$0xff] }
 0x14f   : > { %1774 = vmatprep.mubr.msk.bf16.mxu0 %vm1165_vm11, %v1122_v50 }
 0x150   : > { %v580_v27 = vpop.permute.xlu1 %579 }
 0x151   : > { %v564_v2 = vpop.permute.xlu0 %563  ;;  %v911_v9 = vsel %vm881_vm3, %v3094_v52, %v580_v27 }
 0x152   : > { %v895_v22 = vsel %vm881_vm3, %v3095_v61, %v564_v2 }
 0x154   : > { %v876_v17 = vpop.permute.xlu1 %875 }
 0x155   : > { %v1140_v3 = vsel %vm1112_vm10, %v1107_v28, %v876_v17  ;;  %v860_v55 = vpop.permute.xlu0 %859 }
 0x156   : > { %1791 = vmatmul.mubr.msk.bf16.gmra.mrb[8].mxu1 %vm1165_vm11, %v1140_v3  ;;  %v1124_v45 = vsel %vm1112_vm10, %v1091_v56, %v860_v55 }
 0x157   : > { %1775 = vmatmul.mubr.msk.bf16.gmra.mrb[8].mxu0 %vm1165_vm11, %v1124_v45 }
 0x158   : > { %v582_v8 = vpop.permute.xlu1 %581 }
 0x159   : > { %v566_v40 = vpop.permute.xlu0 %565  ;;  %v913_v0 = vsel %vm881_vm3, %v3096_v43, %v582_v8 }
 0x15a   : > { %v897_v31 = vsel %vm881_vm3, %v3097_v37, %v566_v40 }
 0x15c   : > { %v646_v7 = vpop.permute.xlu1 %645 }
 0x15d   : > { %v630_v24 = vpop.permute.xlu0 %629  ;;  %v944_v14 = vsel %vm914_vm4, %v911_v9, %v646_v7  ;;  %v2901_v7 = vld [vmem:[%s3077_s3] ss:$0 sm:$0xff] }
 0x15e   : > { %v928_v54 = vsel %vm914_vm4, %v895_v22, %v630_v24  ;;  %v2907_v24 = vld [vmem:[%s3077_s3 + $0x1] ss:$0 sm:$0xff] }
 0x160   : > { %v648_v62 = vpop.permute.xlu1 %647 }
 0x161   : > { %v632_v36 = vpop.permute.xlu0 %631  ;;  %v946_v25 = vsel %vm914_vm4, %v913_v0, %v648_v62 }
 0x162   : > { %v930_v35 = vsel %vm914_vm4, %v897_v31, %v632_v36 }
 0x164   : > { %v678_v53 = vpop.permute.xlu1 %677 }
 0x165   : > { %v662_v15 = vpop.permute.xlu0 %661  ;;  %v977_v48 = vsel %vm947_vm6, %v944_v14, %v678_v53 }
 0x166   : > { %v961_v29 = vsel %vm947_vm6, %v928_v54, %v662_v15 }
 0x168   : > { %v680_v12 = vpop.permute.xlu1 %679 }
 0x169   : > { %v664_v51 = vpop.permute.xlu0 %663  ;;  %v979_v46 = vsel %vm947_vm6, %v946_v25, %v680_v12 }
 0x16a   : > { %v963_v18 = vsel %vm947_vm6, %v930_v35, %v664_v51 }
 0x16c   : > { %v726_v6 = vpop.permute.xlu1 %725 }
 0x16d   : > { %v710_v32 = vpop.permute.xlu0 %709  ;;  %v1010_v63 = vsel %vm980_vm5, %v977_v48, %v726_v6 }
 0x16e   : > { %v994_v26 = vsel %vm980_vm5, %v961_v29, %v710_v32 }
 0x170   : > { %v728_v57 = vpop.permute.xlu1 %727 }
 0x171   : > { %v712_v49 = vpop.permute.xlu0 %711  ;;  %v1012_v27 = vsel %vm980_vm5, %v979_v46, %v728_v57 }
 0x172   : > { %v996_v58 = vsel %vm980_vm5, %v963_v18, %v712_v49 }
 0x174   : > { %v762_v33 = vpop.permute.xlu1 %761 }
 0x175   : > { %v746_v11 = vpop.permute.xlu0 %745  ;;  %v1043_v47 = vsel %vm1013_vm7, %v1010_v63, %v762_v33 }
 0x176   : > { %v1027_v50 = vsel %vm1013_vm7, %v994_v26, %v746_v11 }
 0x178   : > { %v764_v5 = vpop.permute.xlu1 %763 }
 0x179   : > { %v748_v1 = vpop.permute.xlu0 %747  ;;  %v1045_v34 = vsel %vm1013_vm7, %v1012_v27, %v764_v5 }
 0x17a   : > { %v1029_v17 = vsel %vm1013_vm7, %v996_v58, %v748_v1 }
 0x17c   : > { %v794_v42 = vpop.permute.xlu1 %793 }
 0x17d   : > { %v778_v60 = vpop.permute.xlu0 %777  ;;  %v1076_v20 = vsel %vm1046_vm8, %v1043_v47, %v794_v42 }
 0x17e   : > { %v1060_v13 = vsel %vm1046_vm8, %v1027_v50, %v778_v60 }
 0x180   : > { %v796_v21 = vpop.permute.xlu1 %795 }
 0x181   : > { %v780_v44 = vpop.permute.xlu0 %779  ;;  %v1078_v41 = vsel %vm1046_vm8, %v1045_v34, %v796_v21 }
 0x182   : > { %v1062_v56 = vsel %vm1046_vm8, %v1029_v17, %v780_v44 }
 0x184   : > { %v842_v4 = vpop.permute.xlu1 %841 }
 0x185   : > { %v826_v23 = vpop.permute.xlu0 %825  ;;  %v1109_v39 = vsel %vm1079_vm9, %v1076_v20, %v842_v4 }
 0x186   : > { %v1093_v2 = vsel %vm1079_vm9, %v1060_v13, %v826_v23 }
 0x188   : > { %v844_v59 = vpop.permute.xlu1 %843 }
 0x189   : > { %v828_v19 = vpop.permute.xlu0 %827  ;;  %v1111_v10 = vsel %vm1079_vm9, %v1078_v41, %v844_v59 }
 0x18a   : > { %v1095_v45 = vsel %vm1079_vm9, %v1062_v56, %v828_v19 }
 0x18c   : > { %v878_v38 = vpop.permute.xlu1 %877 }
 0x18d   : > { %v1142_v16 = vsel %vm1112_vm10, %v1109_v39, %v878_v38  ;;  %v862_v30 = vpop.permute.xlu0 %861 }
 0x18e   : > { %1794 = vmatprep.mubr.msk.bf16.mxu1 %vm1165_vm11, %v1142_v16  ;;  %v1126_v28 = vsel %vm1112_vm10, %v1093_v2, %v862_v30 }
 0x18f   : > { %1778 = vmatprep.mubr.msk.bf16.mxu0 %vm1165_vm11, %v1126_v28 }
 0x190   : > { %v880_v3 = vpop.permute.xlu1 %879 }
 0x191   : > { %v1144_v55 = vsel %vm1112_vm10, %v1111_v10, %v880_v3  ;;  %v864_v8 = vpop.permute.xlu0 %863 }
 0x192   : > { %1795 = vmatmul.mubr.msk.bf16.gmra.mrb[12].mxu1 %vm1165_vm11, %v1144_v55  ;;  %v1128_v40 = vsel %vm1112_vm10, %v1095_v45, %v864_v8 }
 0x193   : > { %1779 = vmatmul.mubr.msk.bf16.gmra.mrb[12].mxu0 %vm1165_vm11, %v1128_v40 }
 0x1a9   : > { %v1784_v62 = vpop.f32.mrb[0].mxu1 }
 0x1aa   : > { %v1386_v36 = vmul.f32 %v1784_v62, %v2901_v7  ;;  %v1300_v53 = vpop.f32.mrb[1].mxu1  ;;  %v1768_v15 = vpop.f32.mrb[0].mxu0 }
 0x1ab   : > { %v1384_v12 = vmul.f32 %v2901_v7, %v1300_v53  ;;  %v1785_v51 = vpop.f32.mrb[2].mxu1  ;;  %v1370_v6 = vmul.f32 %v1768_v15, %v2901_v7  ;;  %v1236_v57 = vpop.f32.mrb[1].mxu0 }
 0x1ac   : > { %v1423_v32 = vadd.f32 %v2907_v24, %v1386_v36  ;;  %v1387_v49 = vmul.f32 %v1785_v51, %v2901_v7  ;;  %v1303_v33 = vpop.f32.mrb[3].mxu1  ;;  %v1368_v11 = vmul.f32 %v2901_v7, %v1236_v57  ;;  %v1769_v1 = vpop.f32.mrb[2].mxu0 }
 0x1ad   : > { %v1421_v5 = vadd.f32 %v2907_v24, %v1384_v12  ;;  %v1385_v42 = vmul.f32 %v2901_v7, %v1303_v33  ;;  %v1407_v60 = vadd.f32 %v2907_v24, %v1370_v6  ;;  %v1371_v44 = vmul.f32 %v1769_v1, %v2901_v7  ;;  %v1239_v4 = vpop.f32.mrb[3].mxu0 }
 0x1ae   : > { %vm1455_vm12 = vcmp.ge.f32.partialorder %v1423_v32, 0.0  ;;  %v1487_v21 = vmul.f32 0.1, %v1423_v32  ;;  %v1405_v52 = vadd.f32 %v2907_v24, %v1368_v11  ;;  %v1424_v23 = vadd.f32 %v2907_v24, %v1387_v49 }
 0x1af   : > { %vm1453_vm13 = vcmp.ge.f32.partialorder %v1421_v5, 0.0  ;;  %v1485_v9 = vmul.f32 0.1, %v1421_v5  ;;  %vm1439_vm14 = vcmp.ge.f32.partialorder %v1407_v60, 0.0  ;;  %v1471_v14 = vmul.f32 0.1, %v1407_v60 }
 0x1b0   : > { %v1519_v61 = vsel %vm1455_vm12, %v1423_v32, %v1487_v21  ;;  %v1408_v22 = vadd.f32 %v2907_v24, %v1371_v44  ;;  %vm1437_vm15 = vcmp.ge.f32.partialorder %v1405_v52, 0.0  ;;  %v1469_v48 = vmul.f32 0.1, %v1405_v52 }
 0x1b1   : > { %1551 = vst [vmem:[%s2924_s11 + $0x90] sm:$0xff] %v1519_v61  ;;  %v1517_v59 = vsel %vm1453_vm13, %v1421_v5, %v1485_v9  ;;  %vm1456_vm0 = vcmp.ge.f32.partialorder %v1424_v23, 0.0  ;;  %v1503_v54 = vsel %vm1439_vm14, %v1407_v60, %v1471_v14  ;;  %v1488_v43 = vmul.f32 0.1, %v1424_v23 }
 0x1b2   : > { %1549 = vst [vmem:[%s2924_s11 + $0x80] sm:$0xff] %v1517_v59  ;;  %vm1440_vm1 = vcmp.ge.f32.partialorder %v1408_v22, 0.0  ;;  %v1472_v63 = vmul.f32 0.1, %v1408_v22  ;;  %1535 = vst [vmem:[%s2924_s11 + $0x10] sm:$0xff] %v1503_v54  ;;  %v1501_v0 = vsel %vm1437_vm15, %v1405_v52, %v1469_v48  ;;  %v1369_v29 = vmul.f32 %v2901_v7, %v1239_v4 }
 0x1b3   : > { %v1422_v47 = vadd.f32 %v2907_v24, %v1385_v42  ;;  %1533 = vst [vmem:[%s2924_s11] sm:$0xff] %v1501_v0  ;;  %v1520_v25 = vsel %vm1456_vm0, %v1424_v23, %v1488_v43 }
 0x1b4   : > { %v1504_v19 = vsel %vm1440_vm1, %v1408_v22, %v1472_v63  ;;  %1552 = vst [vmem:[%s2924_s11 + $0x98] sm:$0xff] %v1520_v25  ;;  %v1406_v26 = vadd.f32 %v2907_v24, %v1369_v29 }
 0x1b5   : > { %1536 = vst [vmem:[%s2924_s11 + $0x18] sm:$0xff] %v1504_v19  ;;  %vm1454_vm2 = vcmp.ge.f32.partialorder %v1422_v47, 0.0  ;;  %v1486_v20 = vmul.f32 0.1, %v1422_v47 }
 0x1b6   : > { %vm1438_vm3 = vcmp.ge.f32.partialorder %v1406_v26, 0.0  ;;  %v1470_v37 = vmul.f32 0.1, %v1406_v26 }
 0x1b7   : > { %v1518_v31 = vsel %vm1454_vm2, %v1422_v47, %v1486_v20 }
 0x1b8   : > { %1550 = vst [vmem:[%s2924_s11 + $0x88] sm:$0xff] %v1518_v31  ;;  %v1502_v46 = vsel %vm1438_vm3, %v1406_v26, %v1470_v37 }
 0x1b9   : > { %1534 = vst [vmem:[%s2924_s11 + $0x8] sm:$0xff] %v1502_v46 }
 0x1e9   : > { %v1788_v50 = vpop.f32.mrb[4].mxu1 }
 0x1ea   : > { %v1390_v39 = vmul.f32 %v1788_v50, %v2901_v7  ;;  %v1316_v38 = vpop.f32.mrb[5].mxu1  ;;  %v1772_v35 = vpop.f32.mrb[4].mxu0 }
 0x1eb   : > { %v1388_v27 = vmul.f32 %v2901_v7, %v1316_v38  ;;  %v1789_v13 = vpop.f32.mrb[6].mxu1  ;;  %v1374_v16 = vmul.f32 %v1772_v35, %v2901_v7  ;;  %v1252_v34 = vpop.f32.mrb[5].mxu0 }
 0x1ec   : > { %v1427_v18 = vadd.f32 %v2907_v24, %v1390_v39  ;;  %v1391_v2 = vmul.f32 %v1789_v13, %v2901_v7  ;;  %v1319_v30 = vpop.f32.mrb[7].mxu1  ;;  %v1372_v58 = vmul.f32 %v2901_v7, %v1252_v34  ;;  %v1773_v28 = vpop.f32.mrb[6].mxu0 }
 0x1ed   : > { %v1425_v41 = vadd.f32 %v2907_v24, %v1388_v27  ;;  %v1389_v17 = vmul.f32 %v2901_v7, %v1319_v30  ;;  %v1411_v10 = vadd.f32 %v2907_v24, %v1374_v16  ;;  %v1375_v56 = vmul.f32 %v1773_v28, %v2901_v7  ;;  %v1255_v55 = vpop.f32.mrb[7].mxu0 }
 0x1ee   : > { %vm1459_vm4 = vcmp.ge.f32.partialorder %v1427_v18, 0.0  ;;  %v1491_v3 = vmul.f32 0.1, %v1427_v18  ;;  %v1409_v45 = vadd.f32 %v2907_v24, %v1372_v58  ;;  %v1428_v40 = vadd.f32 %v2907_v24, %v1391_v2 }
 0x1ef   : > { %vm1457_vm5 = vcmp.ge.f32.partialorder %v1425_v41, 0.0  ;;  %v1489_v8 = vmul.f32 0.1, %v1425_v41  ;;  %vm1443_vm6 = vcmp.ge.f32.partialorder %v1411_v10, 0.0  ;;  %v1475_v62 = vmul.f32 0.1, %v1411_v10 }
 0x1f0   : > { %v1523_v36 = vsel %vm1459_vm4, %v1427_v18, %v1491_v3  ;;  %v1412_v53 = vadd.f32 %v2907_v24, %v1375_v56  ;;  %vm1441_vm7 = vcmp.ge.f32.partialorder %v1409_v45, 0.0  ;;  %v1473_v15 = vmul.f32 0.1, %v1409_v45 }
 0x1f1   : > { %1555 = vst [vmem:[%s2924_s11 + $0xb0] sm:$0xff] %v1523_v36  ;;  %v1521_v12 = vsel %vm1457_vm5, %v1425_v41, %v1489_v8  ;;  %vm1460_vm8 = vcmp.ge.f32.partialorder %v1428_v40, 0.0  ;;  %v1507_v51 = vsel %vm1443_vm6, %v1411_v10, %v1475_v62  ;;  %v1492_v32 = vmul.f32 0.1, %v1428_v40 }
 0x1f2   : > { %1553 = vst [vmem:[%s2924_s11 + $0xa0] sm:$0xff] %v1521_v12  ;;  %vm1444_vm9 = vcmp.ge.f32.partialorder %v1412_v53, 0.0  ;;  %v1476_v6 = vmul.f32 0.1, %v1412_v53  ;;  %1539 = vst [vmem:[%s2924_s11 + $0x30] sm:$0xff] %v1507_v51  ;;  %v1505_v57 = vsel %vm1441_vm7, %v1409_v45, %v1473_v15  ;;  %v1373_v49 = vmul.f32 %v2901_v7, %v1255_v55 }
 0x1f3   : > { %v1426_v33 = vadd.f32 %v2907_v24, %v1389_v17  ;;  %1537 = vst [vmem:[%s2924_s11 + $0x20] sm:$0xff] %v1505_v57  ;;  %v1524_v5 = vsel %vm1460_vm8, %v1428_v40, %v1492_v32 }
 0x1f4   : > { %v1508_v11 = vsel %vm1444_vm9, %v1412_v53, %v1476_v6  ;;  %1556 = vst [vmem:[%s2924_s11 + $0xb8] sm:$0xff] %v1524_v5  ;;  %v1410_v1 = vadd.f32 %v2907_v24, %v1373_v49 }
 0x1f5   : > { %1540 = vst [vmem:[%s2924_s11 + $0x38] sm:$0xff] %v1508_v11  ;;  %vm1458_vm10 = vcmp.ge.f32.partialorder %v1426_v33, 0.0  ;;  %v1490_v42 = vmul.f32 0.1, %v1426_v33 }
 0x1f6   : > { %vm1442_vm11 = vcmp.ge.f32.partialorder %v1410_v1, 0.0  ;;  %v1474_v60 = vmul.f32 0.1, %v1410_v1 }
 0x1f7   : > { %v1522_v21 = vsel %vm1458_vm10, %v1426_v33, %v1490_v42 }
 0x1f8   : > { %1554 = vst [vmem:[%s2924_s11 + $0xa8] sm:$0xff] %v1522_v21  ;;  %v1506_v44 = vsel %vm1442_vm11, %v1410_v1, %v1474_v60 }
 0x1f9   : > { %1538 = vst [vmem:[%s2924_s11 + $0x28] sm:$0xff] %v1506_v44 }
 0x229   : > { %v1792_v4 = vpop.f32.mrb[8].mxu1 }
 0x22a   : > { %v1394_v52 = vmul.f32 %v1792_v4, %v2901_v7  ;;  %v1332_v9 = vpop.f32.mrb[9].mxu1  ;;  %v1776_v23 = vpop.f32.mrb[8].mxu0 }
 0x22b   : > { %v1392_v14 = vmul.f32 %v2901_v7, %v1332_v9  ;;  %v1793_v61 = vpop.f32.mrb[10].mxu1  ;;  %v1378_v22 = vmul.f32 %v1776_v23, %v2901_v7  ;;  %v1268_v59 = vpop.f32.mrb[9].mxu0 }
 0x22c   : > { %v1431_v48 = vadd.f32 %v2907_v24, %v1394_v52  ;;  %v1395_v54 = vmul.f32 %v1793_v61, %v2901_v7  ;;  %v1335_v63 = vpop.f32.mrb[11].mxu1  ;;  %v1376_v43 = vmul.f32 %v2901_v7, %v1268_v59  ;;  %v1777_v29 = vpop.f32.mrb[10].mxu0 }
 0x22d   : > { %v1429_v0 = vadd.f32 %v2907_v24, %v1392_v14  ;;  %v1393_v47 = vmul.f32 %v2901_v7, %v1335_v63  ;;  %v1415_v19 = vadd.f32 %v2907_v24, %v1378_v22  ;;  %v1379_v26 = vmul.f32 %v1777_v29, %v2901_v7  ;;  %v1271_v20 = vpop.f32.mrb[11].mxu0 }
 0x22e   : > { %vm1463_vm12 = vcmp.ge.f32.partialorder %v1431_v48, 0.0  ;;  %v1495_v25 = vmul.f32 0.1, %v1431_v48  ;;  %v1413_v37 = vadd.f32 %v2907_v24, %v1376_v43  ;;  %v1432_v46 = vadd.f32 %v2907_v24, %v1395_v54 }
 0x22f   : > { %vm1461_vm13 = vcmp.ge.f32.partialorder %v1429_v0, 0.0  ;;  %v1493_v31 = vmul.f32 0.1, %v1429_v0  ;;  %vm1447_vm14 = vcmp.ge.f32.partialorder %v1415_v19, 0.0  ;;  %v1479_v50 = vmul.f32 0.1, %v1415_v19 }
 0x230   : > { %v1527_v39 = vsel %vm1463_vm12, %v1431_v48, %v1495_v25  ;;  %v1416_v38 = vadd.f32 %v2907_v24, %v1379_v26  ;;  %vm1445_vm15 = vcmp.ge.f32.partialorder %v1413_v37, 0.0  ;;  %v1477_v35 = vmul.f32 0.1, %v1413_v37 }
 0x231   : > { %1559 = vst [vmem:[%s2924_s11 + $0xd0] sm:$0xff] %v1527_v39  ;;  %v1525_v27 = vsel %vm1461_vm13, %v1429_v0, %v1493_v31  ;;  %vm1464_vm0 = vcmp.ge.f32.partialorder %v1432_v46, 0.0  ;;  %v1511_v13 = vsel %vm1447_vm14, %v1415_v19, %v1479_v50  ;;  %v1496_v18 = vmul.f32 0.1, %v1432_v46 }
 0x232   : > { %1557 = vst [vmem:[%s2924_s11 + $0xc0] sm:$0xff] %v1525_v27  ;;  %vm1448_vm1 = vcmp.ge.f32.partialorder %v1416_v38, 0.0  ;;  %v1480_v16 = vmul.f32 0.1, %v1416_v38  ;;  %1543 = vst [vmem:[%s2924_s11 + $0x50] sm:$0xff] %v1511_v13  ;;  %v1509_v34 = vsel %vm1445_vm15, %v1413_v37, %v1477_v35  ;;  %v1377_v2 = vmul.f32 %v2901_v7, %v1271_v20 }
 0x233   : > { %v1430_v30 = vadd.f32 %v2907_v24, %v1393_v47  ;;  %1541 = vst [vmem:[%s2924_s11 + $0x40] sm:$0xff] %v1509_v34  ;;  %v1528_v41 = vsel %vm1464_vm0, %v1432_v46, %v1496_v18 }
 0x234   : > { %v1512_v58 = vsel %vm1448_vm1, %v1416_v38, %v1480_v16  ;;  %1560 = vst [vmem:[%s2924_s11 + $0xd8] sm:$0xff] %v1528_v41  ;;  %v1414_v28 = vadd.f32 %v2907_v24, %v1377_v2 }
 0x235   : > { %1544 = vst [vmem:[%s2924_s11 + $0x58] sm:$0xff] %v1512_v58  ;;  %vm1462_vm2 = vcmp.ge.f32.partialorder %v1430_v30, 0.0  ;;  %v1494_v17 = vmul.f32 0.1, %v1430_v30 }
 0x236   : > { %vm1446_vm3 = vcmp.ge.f32.partialorder %v1414_v28, 0.0  ;;  %v1478_v10 = vmul.f32 0.1, %v1414_v28 }
 0x237   : > { %v1526_v3 = vsel %vm1462_vm2, %v1430_v30, %v1494_v17 }
 0x238   : > { %1558 = vst [vmem:[%s2924_s11 + $0xc8] sm:$0xff] %v1526_v3  ;;  %v1510_v56 = vsel %vm1446_vm3, %v1414_v28, %v1478_v10 }
 0x239   : > { %1542 = vst [vmem:[%s2924_s11 + $0x48] sm:$0xff] %v1510_v56 }
 0x265   : > { %v1796_v55 = vpop.f32.mrb[12].mxu1 }
 0x266   : > { %v1398_v45 = vmul.f32 %v1796_v55, %v2901_v7  ;;  %v1348_v8 = vpop.f32.mrb[13].mxu1  ;;  %v1780_v40 = vpop.f32.mrb[12].mxu0 }
 0x267   : > { %v1396_v62 = vmul.f32 %v2901_v7, %v1348_v8  ;;  %v1797_v36 = vpop.f32.mrb[14].mxu1  ;;  %v1382_v53 = vmul.f32 %v1780_v40, %v2901_v7  ;;  %v1284_v12 = vpop.f32.mrb[13].mxu0 }
 0x268   : > { %v1435_v15 = vadd.f32 %v2907_v24, %v1398_v45  ;;  %v1399_v51 = vmul.f32 %v1797_v36, %v2901_v7  ;;  %v1351_v6 = vpop.f32.mrb[15].mxu1  ;;  %v1380_v32 = vmul.f32 %v2901_v7, %v1284_v12  ;;  %v1781_v49 = vpop.f32.mrb[14].mxu0 }
 0x269   : > { %v1433_v57 = vadd.f32 %v2907_v24, %v1396_v62  ;;  %v1397_v33 = vmul.f32 %v2901_v7, %v1351_v6  ;;  %v1419_v11 = vadd.f32 %v2907_v24, %v1382_v53  ;;  %v1383_v1 = vmul.f32 %v1781_v49, %v2901_v7  ;;  %v1287_v42 = vpop.f32.mrb[15].mxu0 }
 0x26a   : > { %vm1467_vm4 = vcmp.ge.f32.partialorder %v1435_v15, 0.0  ;;  %v1499_v5 = vmul.f32 0.1, %v1435_v15  ;;  %v1417_v60 = vadd.f32 %v2907_v24, %v1380_v32  ;;  %v1436_v44 = vadd.f32 %v2907_v24, %v1399_v51 }
 0x26b   : > { %vm1465_vm5 = vcmp.ge.f32.partialorder %v1433_v57, 0.0  ;;  %v1497_v21 = vmul.f32 0.1, %v1433_v57  ;;  %vm1451_vm6 = vcmp.ge.f32.partialorder %v1419_v11, 0.0  ;;  %v1483_v4 = vmul.f32 0.1, %v1419_v11 }
 0x26c   : > { %v1531_v52 = vsel %vm1467_vm4, %v1435_v15, %v1499_v5  ;;  %v1420_v9 = vadd.f32 %v2907_v24, %v1383_v1  ;;  %vm1449_vm7 = vcmp.ge.f32.partialorder %v1417_v60, 0.0  ;;  %v1481_v23 = vmul.f32 0.1, %v1417_v60 }
 0x26d   : > { %1563 = vst [vmem:[%s2924_s11 + $0xf0] sm:$0xff] %v1531_v52  ;;  %v1529_v14 = vsel %vm1465_vm5, %v1433_v57, %v1497_v21  ;;  %vm1468_vm8 = vcmp.ge.f32.partialorder %v1436_v44, 0.0  ;;  %v1515_v61 = vsel %vm1451_vm6, %v1419_v11, %v1483_v4  ;;  %v1500_v48 = vmul.f32 0.1, %v1436_v44 }
 0x26e   : > { %1561 = vst [vmem:[%s2924_s11 + $0xe0] sm:$0xff] %v1529_v14  ;;  %vm1452_vm9 = vcmp.ge.f32.partialorder %v1420_v9, 0.0  ;;  %v1484_v22 = vmul.f32 0.1, %v1420_v9  ;;  %1547 = vst [vmem:[%s2924_s11 + $0x70] sm:$0xff] %v1515_v61  ;;  %v1513_v59 = vsel %vm1449_vm7, %v1417_v60, %v1481_v23  ;;  %v1381_v54 = vmul.f32 %v2901_v7, %v1287_v42 }
 0x26f   : > { %v1434_v63 = vadd.f32 %v2907_v24, %v1397_v33  ;;  %1545 = vst [vmem:[%s2924_s11 + $0x60] sm:$0xff] %v1513_v59  ;;  %v1532_v0 = vsel %vm1468_vm8, %v1436_v44, %v1500_v48 }
 0x270   : > { %v1516_v43 = vsel %vm1452_vm9, %v1420_v9, %v1484_v22  ;;  %1564 = vst [vmem:[%s2924_s11 + $0xf8] sm:$0xff] %v1532_v0  ;;  %v1418_v29 = vadd.f32 %v2907_v24, %v1381_v54 }
 0x271   : > { %1548 = vst [vmem:[%s2924_s11 + $0x78] sm:$0xff] %v1516_v43  ;;  %vm1466_vm10 = vcmp.ge.f32.partialorder %v1434_v63, 0.0  ;;  %v1498_v47 = vmul.f32 0.1, %v1434_v63 }
 0x272   : > { %vm1450_vm11 = vcmp.ge.f32.partialorder %v1418_v29, 0.0  ;;  %v1482_v7 = vmul.f32 0.1, %v1418_v29 }
 0x273   : > { %v1530_v19 = vsel %vm1466_vm10, %v1434_v63, %v1498_v47 }
 0x274   : > { %1562 = vst [vmem:[%s2924_s11 + $0xe8] sm:$0xff] %v1530_v19  ;;  %v1514_v25 = vsel %vm1450_vm11, %v1418_v29, %v1482_v7 }
 0x275   : > { %1546 = vst [vmem:[%s2924_s11 + $0x68] sm:$0xff] %v1514_v25 }
 0x276   : > { %1924 = shalt.err (!%p1921_p9)
}
 0x277   : > { %s1925_s30 = scalar_lea.hbm %s3013_s10, 4096  ;;  %s1929_s19 = scalar_lea.hbm %s3078_s4, 16384 }
 0x278   : > { %p1926_p10 = scmp.ne.s32.totalorder %s3013_s10, %s1925_s30  ;;  %p1930_p13 = scmp.lt.u32.totalorder %s3013_s10, %s3078_s4 }
 0x279   : > { %p1931_p0 = scmp.lt.u32.totalorder %s1929_s19, %s1925_s30  ;;  %p1933_p2 = scmp.lt.u32.totalorder %s1925_s30, %s3013_s10 }
 0x27a   : > { %p1927_p11 = pnand %p1926_p10, %p2093_p3 }
 0x27b   : > { %p1932_p1 = por %p1931_p0, %p1930_p13 }
 0x27c   : > { %p1928_p12 = pneg %p1927_p11 }
 0x27d   : > { %p1934_p4 = por %p1933_p2, %p1932_p1 }
 0x27f   : > { %p1935_p5 = pnand %p1934_p4, %p1928_p12 }
 0x281   : > { %1938 = shalt.err (!%p1935_p5)
}
 0x282   : > { %s2016_s6 = smov 128  }
 0x283   : > { %1807 = dma.vmem_to_hbm [thread:$0]  (%p2093_p3), %s3016_s13, 4096, %s3013_s10, %s3021_s24, %s2016_s6, %s2016_s6, %s2008_s27  }
 0x284 PF: > { %p1813_p6 = scmp.ge.s32.totalorder %s2005_s22, 2  ;;  %s1596_s18 = sand.u32 1, %s1977_s15  }
 0x285   : > { %s1597_s14 = scalar_lea.sflag [#allocation3], %s1596_s18 }
 0x286   : > { %p1810_p7 = pnand %p1813_p6, %p2102_p8 }
 0x288   : > { %1972 = dma.done.wait (!%p1810_p7), %s1597_s14, 4096  }
 0x289   : > { %1974 = vsyncadd (!%p1810_p7), %s1597_s14, 4294963200  ;;  %s17_s22 = sadd.s32 1, %s2005_s22   ;;  %s3098_s15 = smov %s1981_s16 }
 0x28a   : > { %p14_p9 = scmp.ge.s32.totalorder %s17_s22, 6   ;;  %s3099_s16 = smov %s1985_s17 }
 0x28b   : > { %s3100_s17 = smov %s2111_s7  ;;  %s3101_s18 = smov %s1997_s20 }
 0x28c   : > { %s3102_s19 = smov %s2001_s21  ;;  %s3103_s20 = smov %s3106_s25 }
 0x28d   : > { %s3104_s21 = smov %s3110_s26  ;;  %16 = sbr.rel (!%p14_p9) target bundleno = 5 (0x5), region = 74 }
 0x294   :  { %1602 = vsyncpa [#allocation3], 1 }
 0x295   :  { %1604 = vsyncpa [#allocation3 + $0x1], 1 }

</bundles_post_ra>
